<compile_context>
chip_gen: v6e
topology: v6e:2x2x1
jax: 0.10.0
libtpu: 0.0.40
codegen_flags: <defaults>
</compile_context>

<pallas_src>
import numpy as np
import jax
import jax.numpy as jnp
from jax import lax
from jax.experimental import pallas as pl
from jax.experimental.pallas import tpu as pltpu


def _gru_step(gi, h_prev, whh, bhh, H):
    """One GRU step given the precomputed input projection gi = x @ W_ih + b_ih.

    gi, bhh: (1, 3H) with PyTorch gate order [r, z, n]; h_prev: (1, H)."""
    hh = jnp.dot(h_prev, whh, preferred_element_type=jnp.float32) + bhh       # (1, 3H)
    r = jax.nn.sigmoid(gi[:, 0:H] + hh[:, 0:H])
    z = jax.nn.sigmoid(gi[:, H:2 * H] + hh[:, H:2 * H])
    n = jnp.tanh(gi[:, 2 * H:3 * H] + r * hh[:, 2 * H:3 * H])
    return (1.0 - z) * n + z * h_prev


def segbot_kernel(
    x_ref, start_ref,
    ef_wih, ef_whh, ef_bih, ef_bhh,          # encoder forward  (gate-packed, 3H)
    eb_wih, eb_whh, eb_bih, eb_bhh,          # encoder backward (gate-packed, 3H)
    d_wih_f, d_wih_b, d_bih, d_bhh,          # decoder GRU (h0 == 0 -> W_hh drops out)
    w1f, w1b, b1, w2, b2, v,                 # Pointer
    out_ref,
    gif_sc, gib_sc, fwd_sc, bwd_sc,
):
    S, H = fwd_sc.shape
    x = x_ref[...]                                                            # (S, D)

    # ---- Hoisted input projections: one MXU-friendly matmul per direction ----
    gif_sc[...] = jnp.dot(x, ef_wih[...], preferred_element_type=jnp.float32) + ef_bih[...]
    gib_sc[...] = jnp.dot(x, eb_wih[...], preferred_element_type=jnp.float32) + eb_bih[...]

    # Hoist recurrent weights / biases out of the loop.
    whh_f = ef_whh[...]; bhh_f = ef_bhh[...]
    whh_b = eb_whh[...]; bhh_b = eb_bhh[...]

    # ---- Encoder: interleaved fwd/bwd recurrence (two independent chains) ----
    def enc_body(t, carry):
        h_f, h_b = carry
        tb = S - 1 - t
        h_f = _gru_step(gif_sc[pl.ds(t, 1), :], h_f, whh_f, bhh_f, H)
        h_b = _gru_step(gib_sc[pl.ds(tb, 1), :], h_b, whh_b, bhh_b, H)
        fwd_sc[pl.ds(t, 1), :] = h_f
        bwd_sc[pl.ds(tb, 1), :] = h_b
        return h_f, h_b

    h0 = jnp.zeros((1, H), jnp.float32)
    lax.fori_loop(0, S, enc_body, (h0, h0), unroll=True)

    # ---- Decoder: single GRU step from zero hidden state ----
    su = start_ref[0]
    f_su = fwd_sc[pl.ds(su, 1), :]                                            # (1, H)
    b_su = bwd_sc[pl.ds(su, 1), :]                                            # (1, H)
    gi = (jnp.dot(f_su, d_wih_f[...], preferred_element_type=jnp.float32)
          + jnp.dot(b_su, d_wih_b[...], preferred_element_type=jnp.float32)
          + d_bih[...])                                                       # (1, 3H)
    bhh_d = d_bhh[...]
    # h_prev == 0  =>  W_hh @ h_prev == 0, only the hidden biases remain.
    r = jax.nn.sigmoid(gi[:, 0:H] + bhh_d[:, 0:H])
    z = jax.nn.sigmoid(gi[:, H:2 * H] + bhh_d[:, H:2 * H])
    n = jnp.tanh(gi[:, 2 * H:3 * H] + r * bhh_d[:, 2 * H:3 * H])
    dec_h = (1.0 - z) * n                                                     # (1, H)

    # ---- Pointer (W1 hoisted out of the recurrence; no s1 scratch) ----
    s1 = (jnp.dot(fwd_sc[...], w1f[...], preferred_element_type=jnp.float32)
          + jnp.dot(bwd_sc[...], w1b[...], preferred_element_type=jnp.float32)
          + b1[...])                                                          # (S, H)
    s2 = jnp.dot(dec_h, w2[...], preferred_element_type=jnp.float32) + b2[...]  # (1, H)
    pre = jnp.tanh(s1 + s2)                                                   # (S, H)
    scores = jnp.sum(pre * v[...], axis=-1, keepdims=True)                    # (S, 1)
    m = jnp.max(scores)                                                       # softmax over S
    e = jnp.exp(scores - m)
    out_ref[...] = e / jnp.sum(e)


def _pack_gates(w):
    """Per-gate (3, A, H) [r, z, n]  ->  fused (A, 3H)."""
    return jnp.concatenate([w[0], w[1], w[2]], axis=-1)


def segbot_forward(params, x_bsd, start_units):
    """x_bsd: (B, S, D), batch-first like the PyTorch module (B must be 1).

    Returns attention weights of shape (B, S, 1)."""
    B, S, D = x_bsd.shape
    if B != 1:
        raise ValueError("SEGBOT's Pointer broadcast is only well-defined for batch size 1.")
    H = params["ef_whh"].shape[-1]

    x = x_bsd[0].astype(jnp.float32)                       # (S, D), time-major
    start = jnp.asarray([start_units], jnp.int32)

    p = params
    packed = [
        _pack_gates(p["ef_wih"]), _pack_gates(p["ef_whh"]),
        _pack_gates(p["ef_bih"]), _pack_gates(p["ef_bhh"]),
        _pack_gates(p["eb_wih"]), _pack_gates(p["eb_whh"]),
        _pack_gates(p["eb_bih"]), _pack_gates(p["eb_bhh"]),
        _pack_gates(p["d_wih_f"]), _pack_gates(p["d_wih_b"]),
        _pack_gates(p["d_bih"]), _pack_gates(p["d_bhh"]),
        p["w1f"], p["w1b"], p["b1"], p["w2"], p["b2"], p["v"],
    ]

    vmem = pl.BlockSpec(memory_space=pltpu.MemorySpace.VMEM)
    smem = pl.BlockSpec(memory_space=pltpu.MemorySpace.SMEM)

    attn = pl.pallas_call(
        segbot_kernel,
        out_shape=jax.ShapeDtypeStruct((S, 1), jnp.float32),
        in_specs=[vmem, smem] + [vmem] * len(packed),
        out_specs=vmem,
        scratch_shapes=[
            pltpu.VMEM((S, 3 * H), jnp.float32),   # hoisted fwd input projections
            pltpu.VMEM((S, 3 * H), jnp.float32),   # hoisted bwd input projections
            pltpu.VMEM((S, H), jnp.float32),       # forward encoder states
            pltpu.VMEM((S, H), jnp.float32),       # backward encoder states
        ],
    )(x, start, *packed)

    return attn[None, :, :]                                # (1, S, 1) == (B, S, 1)


# ---------------------------- parameters ----------------------------
def init_params(key, input_dim, hidden_dim):
    H = hidden_dim
    kg = 1.0 / np.sqrt(H)
    k1 = 1.0 / np.sqrt(2 * H)
    spec = {
        "ef_wih": ((3, input_dim, H), kg), "ef_whh": ((3, H, H), kg),
        "ef_bih": ((3, 1, H), kg),         "ef_bhh": ((3, 1, H), kg),
        "eb_wih": ((3, input_dim, H), kg), "eb_whh": ((3, H, H), kg),
        "eb_bih": ((3, 1, H), kg),         "eb_bhh": ((3, 1, H), kg),
        "d_wih_f": ((3, H, H), kg),        "d_wih_b": ((3, H, H), kg),
        "d_bih": ((3, 1, H), kg),          "d_bhh": ((3, 1, H), kg),
        "w1f": ((H, H), k1), "w1b": ((H, H), k1), "b1": ((1, H), k1),
        "w2": ((H, H), kg),  "b2": ((1, H), kg),  "v": ((1, H), kg),
    }
    keys = jax.random.split(key, len(spec))
    return {name: jax.random.uniform(k, shp, jnp.float32, -b, b)
            for k, (name, (shp, b)) in zip(keys, spec.items())}


# ---------------------------- pure-JAX reference ----------------------------
def _gru_seq_ref(x, wih, whh, bih, bhh):
    def step(h, x_t):
        ir = x_t @ wih[0] + bih[0]; iz = x_t @ wih[1] + bih[1]; inn = x_t @ wih[2] + bih[2]
        hr = h @ whh[0] + bhh[0];   hz = h @ whh[1] + bhh[1];   hn = h @ whh[2] + bhh[2]
        r = jax.nn.sigmoid(ir + hr); z = jax.nn.sigmoid(iz + hz)
        n = jnp.tanh(inn + r * hn)
        h_new = (1.0 - z) * n + z * h
        return h_new, h_new
    h0 = jnp.zeros((x.shape[1], whh.shape[-1]), x.dtype)
    _, hs = jax.lax.scan(step, h0, x)
    return hs


def segbot_ref(params, x_bsd, start_units):
    p = params
    x = jnp.transpose(x_bsd.astype(jnp.float32), (1, 0, 2))
    fwd = _gru_seq_ref(x, p["ef_wih"], p["ef_whh"], p["ef_bih"], p["ef_bhh"])
    bwd = jnp.flip(_gru_seq_ref(jnp.flip(x, 0), p["eb_wih"], p["eb_whh"],
                                p["eb_bih"], p["eb_bhh"]), 0)
    f_su, b_su = fwd[start_units], bwd[start_units]
    gi_r = f_su @ p["d_wih_f"][0] + b_su @ p["d_wih_b"][0] + p["d_bih"][0]
    gi_z = f_su @ p["d_wih_f"][1] + b_su @ p["d_wih_b"][1] + p["d_bih"][1]
    gi_n = f_su @ p["d_wih_f"][2] + b_su @ p["d_wih_b"][2] + p["d_bih"][2]
    r = jax.nn.sigmoid(gi_r + p["d_bhh"][0]); z = jax.nn.sigmoid(gi_z + p["d_bhh"][1])
    n = jnp.tanh(gi_n + r * p["d_bhh"][2])
    dec_h = (1.0 - z) * n
    s1 = fwd @ p["w1f"] + bwd @ p["w1b"] + p["b1"]
    s2 = dec_h @ p["w2"] + p["b2"]
    scores = jnp.sum(jnp.tanh(s1 + s2[None]) * p["v"][None], axis=-1)
    attn = jax.nn.softmax(scores, axis=0)
    return jnp.transpose(attn, (1, 0))[..., None]


# TODO(synk): SEGBOT.segment_text is numpy/scipy (find_peaks) post-processing,
# not part of the forward pass, so it is not implemented as a kernel.

if __name__ == "__main__":
    # batch=1 because the original Pointer broadcast is only well-defined there.
    B, S, D, H = 1, 8, 32, 32
    key = jax.random.PRNGKey(0)
    pkey, xkey = jax.random.split(key)
    params = init_params(pkey, D, H)
    x = jax.random.normal(xkey, (B, S, D), jnp.float32)
    start_units = 3

    out = segbot_forward(params, x, start_units)
    out = jax.block_until_ready(out)
    assert out.shape == (B, S, 1)

    ref = segbot_ref(params, x, start_units)
    np.testing.assert_allclose(np.asarray(out), np.asarray(ref), atol=1e-3, rtol=1e-3)
    print("KERNEL_OK")
</pallas_src>

<mosaic_0001>
module attributes {stable_mosaic.version = 11 : i64} {
  func.func @segbot_kernel(%arg0: memref<8x32xf32, #tpu.memory_space<vmem>>, %arg1: memref<1xi32, #tpu.memory_space<smem>>, %arg2: memref<32x96xf32, #tpu.memory_space<vmem>>, %arg3: memref<32x96xf32, #tpu.memory_space<vmem>>, %arg4: memref<1x96xf32, #tpu.memory_space<vmem>>, %arg5: memref<1x96xf32, #tpu.memory_space<vmem>>, %arg6: memref<32x96xf32, #tpu.memory_space<vmem>>, %arg7: memref<32x96xf32, #tpu.memory_space<vmem>>, %arg8: memref<1x96xf32, #tpu.memory_space<vmem>>, %arg9: memref<1x96xf32, #tpu.memory_space<vmem>>, %arg10: memref<32x96xf32, #tpu.memory_space<vmem>>, %arg11: memref<32x96xf32, #tpu.memory_space<vmem>>, %arg12: memref<1x96xf32, #tpu.memory_space<vmem>>, %arg13: memref<1x96xf32, #tpu.memory_space<vmem>>, %arg14: memref<32x32xf32, #tpu.memory_space<vmem>>, %arg15: memref<32x32xf32, #tpu.memory_space<vmem>>, %arg16: memref<1x32xf32, #tpu.memory_space<vmem>>, %arg17: memref<32x32xf32, #tpu.memory_space<vmem>>, %arg18: memref<1x32xf32, #tpu.memory_space<vmem>>, %arg19: memref<1x32xf32, #tpu.memory_space<vmem>>, %arg20: memref<8x1xf32, #tpu.memory_space<vmem>>, %arg21: memref<8x96xf32, #tpu.memory_space<vmem>>, %arg22: memref<8x96xf32, #tpu.memory_space<vmem>>, %arg23: memref<8x32xf32, #tpu.memory_space<vmem>>, %arg24: memref<8x32xf32, #tpu.memory_space<vmem>>) attributes {dimension_semantics = [], scalar_prefetch = 0 : i64, scratch_operands = 4 : i64, tpu.core_type = #tpu.core_type<tc>} {
    %c0 = arith.constant 0 : index
    %c0_0 = arith.constant 0 : index
    %0 = vector.load %arg0[%c0, %c0_0] : memref<8x32xf32, #tpu.memory_space<vmem>>, vector<8x32xf32>
    %c0_1 = arith.constant 0 : index
    %c0_2 = arith.constant 0 : index
    %1 = vector.load %arg2[%c0_1, %c0_2] : memref<32x96xf32, #tpu.memory_space<vmem>>, vector<32x96xf32>
    %cst = arith.constant dense<0.000000e+00> : vector<8x96xf32>
    %2 = tpu.matmul %0, %1, %cst {dimension_numbers = #tpu.dot_dimension_numbers<[1], [0], [0], [1], [0, 0, 1, 1], [], []>} : vector<8x32xf32>, vector<32x96xf32>, vector<8x96xf32> -> vector<8x96xf32>
    %c0_3 = arith.constant 0 : index
    %c0_4 = arith.constant 0 : index
    %3 = vector.load %arg4[%c0_3, %c0_4] : memref<1x96xf32, #tpu.memory_space<vmem>>, vector<1x96xf32>
    %4 = vector.broadcast %3 : vector<1x96xf32> to vector<8x96xf32>
    %5 = arith.addf %2, %4 : vector<8x96xf32>
    %c0_5 = arith.constant 0 : index
    %c0_6 = arith.constant 0 : index
    %6 = vector.load %arg21[%c0_5, %c0_6] : memref<8x96xf32, #tpu.memory_space<vmem>>, vector<8x96xf32>
    tpu.vector_store %arg21[%c0_5, %c0_6], %5 {strides = array<i32>} : memref<8x96xf32, #tpu.memory_space<vmem>>, vector<8x96xf32>,
    %c0_7 = arith.constant 0 : index
    %c0_8 = arith.constant 0 : index
    %7 = vector.load %arg6[%c0_7, %c0_8] : memref<32x96xf32, #tpu.memory_space<vmem>>, vector<32x96xf32>
    %cst_9 = arith.constant dense<0.000000e+00> : vector<8x96xf32>
    %8 = tpu.matmul %0, %7, %cst_9 {dimension_numbers = #tpu.dot_dimension_numbers<[1], [0], [0], [1], [0, 0, 1, 1], [], []>} : vector<8x32xf32>, vector<32x96xf32>, vector<8x96xf32> -> vector<8x96xf32>
    %c0_10 = arith.constant 0 : index
    %c0_11 = arith.constant 0 : index
    %9 = vector.load %arg8[%c0_10, %c0_11] : memref<1x96xf32, #tpu.memory_space<vmem>>, vector<1x96xf32>
    %10 = vector.broadcast %9 : vector<1x96xf32> to vector<8x96xf32>
    %11 = arith.addf %8, %10 : vector<8x96xf32>
    %c0_12 = arith.constant 0 : index
    %c0_13 = arith.constant 0 : index
    %12 = vector.load %arg22[%c0_12, %c0_13] : memref<8x96xf32, #tpu.memory_space<vmem>>, vector<8x96xf32>
    tpu.vector_store %arg22[%c0_12, %c0_13], %11 {strides = array<i32>} : memref<8x96xf32, #tpu.memory_space<vmem>>, vector<8x96xf32>,
    %c0_14 = arith.constant 0 : index
    %c0_15 = arith.constant 0 : index
    %13 = vector.load %arg3[%c0_14, %c0_15] : memref<32x96xf32, #tpu.memory_space<vmem>>, vector<32x96xf32>
    %c0_16 = arith.constant 0 : index
    %c0_17 = arith.constant 0 : index
    %14 = vector.load %arg5[%c0_16, %c0_17] : memref<1x96xf32, #tpu.memory_space<vmem>>, vector<1x96xf32>
    %c0_18 = arith.constant 0 : index
    %c0_19 = arith.constant 0 : index
    %15 = vector.load %arg7[%c0_18, %c0_19] : memref<32x96xf32, #tpu.memory_space<vmem>>, vector<32x96xf32>
    %c0_20 = arith.constant 0 : index
    %c0_21 = arith.constant 0 : index
    %16 = vector.load %arg9[%c0_20, %c0_21] : memref<1x96xf32, #tpu.memory_space<vmem>>, vector<1x96xf32>
    %cst_22 = arith.constant 0.000000e+00 : f32
    %17 = vector.broadcast %cst_22 : f32 to vector<1x32xf32>
    %c0_i32 = arith.constant 0 : i32
    %c7_i32 = arith.constant 7 : i32
    %18 = arith.subi %c7_i32, %c0_i32 : i32
    %19 = arith.index_cast %c0_i32 : i32 to index
    %c0_23 = arith.constant 0 : index
    %20 = vector.load %arg21[%19, %c0_23] : memref<8x96xf32, #tpu.memory_space<vmem>>, vector<1x96xf32>
    %cst_24 = arith.constant dense<0.000000e+00> : vector<1x96xf32>
    %21 = tpu.matmul %17, %13, %cst_24 {dimension_numbers = #tpu.dot_dimension_numbers<[1], [0], [0], [1], [0, 0, 1, 1], [], []>} : vector<1x32xf32>, vector<32x96xf32>, vector<1x96xf32> -> vector<1x96xf32>
    %22 = arith.addf %21, %14 : vector<1x96xf32>
    %23 = vector.extract_strided_slice %20 {offsets = [0, 0], sizes = [1, 32], strides = [1, 1]} : vector<1x96xf32> to vector<1x32xf32>
    %24 = vector.extract_strided_slice %22 {offsets = [0, 0], sizes = [1, 32], strides = [1, 1]} : vector<1x96xf32> to vector<1x32xf32>
    %25 = arith.addf %23, %24 : vector<1x32xf32>
    %26 = arith.negf %25 : vector<1x32xf32>
    %27 = math.exp %26 : vector<1x32xf32>
    %cst_25 = arith.constant 1.000000e+00 : f32
    %28 = vector.broadcast %cst_25 : f32 to vector<1x32xf32>
    %29 = arith.addf %28, %27 : vector<1x32xf32>
    %30 = arith.divf %28, %29 : vector<1x32xf32>
    %31 = vector.extract_strided_slice %20 {offsets = [0, 32], sizes = [1, 32], strides = [1, 1]} : vector<1x96xf32> to vector<1x32xf32>
    %32 = vector.extract_strided_slice %22 {offsets = [0, 32], sizes = [1, 32], strides = [1, 1]} : vector<1x96xf32> to vector<1x32xf32>
    %33 = arith.addf %31, %32 : vector<1x32xf32>
    %34 = arith.negf %33 : vector<1x32xf32>
    %35 = math.exp %34 : vector<1x32xf32>
    %cst_26 = arith.constant 1.000000e+00 : f32
    %36 = vector.broadcast %cst_26 : f32 to vector<1x32xf32>
    %37 = arith.addf %36, %35 : vector<1x32xf32>
    %38 = arith.divf %36, %37 : vector<1x32xf32>
    %39 = vector.extract_strided_slice %20 {offsets = [0, 64], sizes = [1, 32], strides = [1, 1]} : vector<1x96xf32> to vector<1x32xf32>
    %40 = vector.extract_strided_slice %22 {offsets = [0, 64], sizes = [1, 32], strides = [1, 1]} : vector<1x96xf32> to vector<1x32xf32>
    %41 = arith.mulf %30, %40 : vector<1x32xf32>
    %42 = arith.addf %39, %41 : vector<1x32xf32>
    %43 = math.tanh %42 : vector<1x32xf32>
    %cst_27 = arith.constant 1.000000e+00 : f32
    %44 = vector.broadcast %cst_27 : f32 to vector<1x32xf32>
    %45 = arith.subf %44, %38 : vector<1x32xf32>
    %46 = arith.mulf %45, %43 : vector<1x32xf32>
    %47 = arith.mulf %38, %17 : vector<1x32xf32>
    %48 = arith.addf %46, %47 : vector<1x32xf32>
    %49 = arith.index_cast %18 : i32 to index
    %c0_28 = arith.constant 0 : index
    %50 = vector.load %arg22[%49, %c0_28] : memref<8x96xf32, #tpu.memory_space<vmem>>, vector<1x96xf32>
    %cst_29 = arith.constant dense<0.000000e+00> : vector<1x96xf32>
    %51 = tpu.matmul %17, %15, %cst_29 {dimension_numbers = #tpu.dot_dimension_numbers<[1], [0], [0], [1], [0, 0, 1, 1], [], []>} : vector<1x32xf32>, vector<32x96xf32>, vector<1x96xf32> -> vector<1x96xf32>
    %52 = arith.addf %51, %16 : vector<1x96xf32>
    %53 = vector.extract_strided_slice %50 {offsets = [0, 0], sizes = [1, 32], strides = [1, 1]} : vector<1x96xf32> to vector<1x32xf32>
    %54 = vector.extract_strided_slice %52 {offsets = [0, 0], sizes = [1, 32], strides = [1, 1]} : vector<1x96xf32> to vector<1x32xf32>
    %55 = arith.addf %53, %54 : vector<1x32xf32>
    %56 = arith.negf %55 : vector<1x32xf32>
    %57 = math.exp %56 : vector<1x32xf32>
    %cst_30 = arith.constant 1.000000e+00 : f32
    %58 = vector.broadcast %cst_30 : f32 to vector<1x32xf32>
    %59 = arith.addf %58, %57 : vector<1x32xf32>
    %60 = arith.divf %58, %59 : vector<1x32xf32>
    %61 = vector.extract_strided_slice %50 {offsets = [0, 32], sizes = [1, 32], strides = [1, 1]} : vector<1x96xf32> to vector<1x32xf32>
    %62 = vector.extract_strided_slice %52 {offsets = [0, 32], sizes = [1, 32], strides = [1, 1]} : vector<1x96xf32> to vector<1x32xf32>
    %63 = arith.addf %61, %62 : vector<1x32xf32>
    %64 = arith.negf %63 : vector<1x32xf32>
    %65 = math.exp %64 : vector<1x32xf32>
    %cst_31 = arith.constant 1.000000e+00 : f32
    %66 = vector.broadcast %cst_31 : f32 to vector<1x32xf32>
    %67 = arith.addf %66, %65 : vector<1x32xf32>
    %68 = arith.divf %66, %67 : vector<1x32xf32>
    %69 = vector.extract_strided_slice %50 {offsets = [0, 64], sizes = [1, 32], strides = [1, 1]} : vector<1x96xf32> to vector<1x32xf32>
    %70 = vector.extract_strided_slice %52 {offsets = [0, 64], sizes = [1, 32], strides = [1, 1]} : vector<1x96xf32> to vector<1x32xf32>
    %71 = arith.mulf %60, %70 : vector<1x32xf32>
    %72 = arith.addf %69, %71 : vector<1x32xf32>
    %73 = math.tanh %72 : vector<1x32xf32>
    %cst_32 = arith.constant 1.000000e+00 : f32
    %74 = vector.broadcast %cst_32 : f32 to vector<1x32xf32>
    %75 = arith.subf %74, %68 : vector<1x32xf32>
    %76 = arith.mulf %75, %73 : vector<1x32xf32>
    %77 = arith.mulf %68, %17 : vector<1x32xf32>
    %78 = arith.addf %76, %77 : vector<1x32xf32>
    %79 = arith.index_cast %c0_i32 : i32 to index
    %c0_33 = arith.constant 0 : index
    %80 = vector.load %arg23[%79, %c0_33] : memref<8x32xf32, #tpu.memory_space<vmem>>, vector<1x32xf32>
    tpu.vector_store %arg23[%79, %c0_33], %48 {strides = array<i32>} : memref<8x32xf32, #tpu.memory_space<vmem>>, vector<1x32xf32>,
    %81 = arith.index_cast %18 : i32 to index
    %c0_34 = arith.constant 0 : index
    %82 = vector.load %arg24[%81, %c0_34] : memref<8x32xf32, #tpu.memory_space<vmem>>, vector<1x32xf32>
    tpu.vector_store %arg24[%81, %c0_34], %78 {strides = array<i32>} : memref<8x32xf32, #tpu.memory_space<vmem>>, vector<1x32xf32>,
    %c1_i32 = arith.constant 1 : i32
    %c7_i32_35 = arith.constant 7 : i32
    %83 = arith.subi %c7_i32_35, %c1_i32 : i32
    %84 = arith.index_cast %c1_i32 : i32 to index
    %c0_36 = arith.constant 0 : index
    %85 = vector.load %arg21[%84, %c0_36] : memref<8x96xf32, #tpu.memory_space<vmem>>, vector<1x96xf32>
    %cst_37 = arith.constant dense<0.000000e+00> : vector<1x96xf32>
    %86 = tpu.matmul %48, %13, %cst_37 {dimension_numbers = #tpu.dot_dimension_numbers<[1], [0], [0], [1], [0, 0, 1, 1], [], []>} : vector<1x32xf32>, vector<32x96xf32>, vector<1x96xf32> -> vector<1x96xf32>
    %87 = arith.addf %86, %14 : vector<1x96xf32>
    %88 = vector.extract_strided_slice %85 {offsets = [0, 0], sizes = [1, 32], strides = [1, 1]} : vector<1x96xf32> to vector<1x32xf32>
    %89 = vector.extract_strided_slice %87 {offsets = [0, 0], sizes = [1, 32], strides = [1, 1]} : vector<1x96xf32> to vector<1x32xf32>
    %90 = arith.addf %88, %89 : vector<1x32xf32>
    %91 = arith.negf %90 : vector<1x32xf32>
    %92 = math.exp %91 : vector<1x32xf32>
    %cst_38 = arith.constant 1.000000e+00 : f32
    %93 = vector.broadcast %cst_38 : f32 to vector<1x32xf32>
    %94 = arith.addf %93, %92 : vector<1x32xf32>
    %95 = arith.divf %93, %94 : vector<1x32xf32>
    %96 = vector.extract_strided_slice %85 {offsets = [0, 32], sizes = [1, 32], strides = [1, 1]} : vector<1x96xf32> to vector<1x32xf32>
    %97 = vector.extract_strided_slice %87 {offsets = [0, 32], sizes = [1, 32], strides = [1, 1]} : vector<1x96xf32> to vector<1x32xf32>
    %98 = arith.addf %96, %97 : vector<1x32xf32>
    %99 = arith.negf %98 : vector<1x32xf32>
    %100 = math.exp %99 : vector<1x32xf32>
    %cst_39 = arith.constant 1.000000e+00 : f32
    %101 = vector.broadcast %cst_39 : f32 to vector<1x32xf32>
    %102 = arith.addf %101, %100 : vector<1x32xf32>
    %103 = arith.divf %101, %102 : vector<1x32xf32>
    %104 = vector.extract_strided_slice %85 {offsets = [0, 64], sizes = [1, 32], strides = [1, 1]} : vector<1x96xf32> to vector<1x32xf32>
    %105 = vector.extract_strided_slice %87 {offsets = [0, 64], sizes = [1, 32], strides = [1, 1]} : vector<1x96xf32> to vector<1x32xf32>
    %106 = arith.mulf %95, %105 : vector<1x32xf32>
    %107 = arith.addf %104, %106 : vector<1x32xf32>
    %108 = math.tanh %107 : vector<1x32xf32>
    %cst_40 = arith.constant 1.000000e+00 : f32
    %109 = vector.broadcast %cst_40 : f32 to vector<1x32xf32>
    %110 = arith.subf %109, %103 : vector<1x32xf32>
    %111 = arith.mulf %110, %108 : vector<1x32xf32>
    %112 = arith.mulf %103, %48 : vector<1x32xf32>
    %113 = arith.addf %111, %112 : vector<1x32xf32>
    %114 = arith.index_cast %83 : i32 to index
    %c0_41 = arith.constant 0 : index
    %115 = vector.load %arg22[%114, %c0_41] : memref<8x96xf32, #tpu.memory_space<vmem>>, vector<1x96xf32>
    %cst_42 = arith.constant dense<0.000000e+00> : vector<1x96xf32>
    %116 = tpu.matmul %78, %15, %cst_42 {dimension_numbers = #tpu.dot_dimension_numbers<[1], [0], [0], [1], [0, 0, 1, 1], [], []>} : vector<1x32xf32>, vector<32x96xf32>, vector<1x96xf32> -> vector<1x96xf32>
    %117 = arith.addf %116, %16 : vector<1x96xf32>
    %118 = vector.extract_strided_slice %115 {offsets = [0, 0], sizes = [1, 32], strides = [1, 1]} : vector<1x96xf32> to vector<1x32xf32>
    %119 = vector.extract_strided_slice %117 {offsets = [0, 0], sizes = [1, 32], strides = [1, 1]} : vector<1x96xf32> to vector<1x32xf32>
    %120 = arith.addf %118, %119 : vector<1x32xf32>
    %121 = arith.negf %120 : vector<1x32xf32>
    %122 = math.exp %121 : vector<1x32xf32>
    %cst_43 = arith.constant 1.000000e+00 : f32
    %123 = vector.broadcast %cst_43 : f32 to vector<1x32xf32>
    %124 = arith.addf %123, %122 : vector<1x32xf32>
    %125 = arith.divf %123, %124 : vector<1x32xf32>
    %126 = vector.extract_strided_slice %115 {offsets = [0, 32], sizes = [1, 32], strides = [1, 1]} : vector<1x96xf32> to vector<1x32xf32>
    %127 = vector.extract_strided_slice %117 {offsets = [0, 32], sizes = [1, 32], strides = [1, 1]} : vector<1x96xf32> to vector<1x32xf32>
    %128 = arith.addf %126, %127 : vector<1x32xf32>
    %129 = arith.negf %128 : vector<1x32xf32>
    %130 = math.exp %129 : vector<1x32xf32>
    %cst_44 = arith.constant 1.000000e+00 : f32
    %131 = vector.broadcast %cst_44 : f32 to vector<1x32xf32>
    %132 = arith.addf %131, %130 : vector<1x32xf32>
    %133 = arith.divf %131, %132 : vector<1x32xf32>
    %134 = vector.extract_strided_slice %115 {offsets = [0, 64], sizes = [1, 32], strides = [1, 1]} : vector<1x96xf32> to vector<1x32xf32>
    %135 = vector.extract_strided_slice %117 {offsets = [0, 64], sizes = [1, 32], strides = [1, 1]} : vector<1x96xf32> to vector<1x32xf32>
    %136 = arith.mulf %125, %135 : vector<1x32xf32>
    %137 = arith.addf %134, %136 : vector<1x32xf32>
    %138 = math.tanh %137 : vector<1x32xf32>
    %cst_45 = arith.constant 1.000000e+00 : f32
    %139 = vector.broadcast %cst_45 : f32 to vector<1x32xf32>
    %140 = arith.subf %139, %133 : vector<1x32xf32>
    %141 = arith.mulf %140, %138 : vector<1x32xf32>
    %142 = arith.mulf %133, %78 : vector<1x32xf32>
    %143 = arith.addf %141, %142 : vector<1x32xf32>
    %144 = arith.index_cast %c1_i32 : i32 to index
    %c0_46 = arith.constant 0 : index
    %145 = vector.load %arg23[%144, %c0_46] : memref<8x32xf32, #tpu.memory_space<vmem>>, vector<1x32xf32>
    tpu.vector_store %arg23[%144, %c0_46], %113 {strides = array<i32>} : memref<8x32xf32, #tpu.memory_space<vmem>>, vector<1x32xf32>,
    %146 = arith.index_cast %83 : i32 to index
    %c0_47 = arith.constant 0 : index
    %147 = vector.load %arg24[%146, %c0_47] : memref<8x32xf32, #tpu.memory_space<vmem>>, vector<1x32xf32>
    tpu.vector_store %arg24[%146, %c0_47], %143 {strides = array<i32>} : memref<8x32xf32, #tpu.memory_space<vmem>>, vector<1x32xf32>,
    %c2_i32 = arith.constant 2 : i32
    %c7_i32_48 = arith.constant 7 : i32
    %148 = arith.subi %c7_i32_48, %c2_i32 : i32
    %149 = arith.index_cast %c2_i32 : i32 to index
    %c0_49 = arith.constant 0 : index
    %150 = vector.load %arg21[%149, %c0_49] : memref<8x96xf32, #tpu.memory_space<vmem>>, vector<1x96xf32>
    %cst_50 = arith.constant dense<0.000000e+00> : vector<1x96xf32>
    %151 = tpu.matmul %113, %13, %cst_50 {dimension_numbers = #tpu.dot_dimension_numbers<[1], [0], [0], [1], [0, 0, 1, 1], [], []>} : vector<1x32xf32>, vector<32x96xf32>, vector<1x96xf32> -> vector<1x96xf32>
    %152 = arith.addf %151, %14 : vector<1x96xf32>
    %153 = vector.extract_strided_slice %150 {offsets = [0, 0], sizes = [1, 32], strides = [1, 1]} : vector<1x96xf32> to vector<1x32xf32>
    %154 = vector.extract_strided_slice %152 {offsets = [0, 0], sizes = [1, 32], strides = [1, 1]} : vector<1x96xf32> to vector<1x32xf32>
    %155 = arith.addf %153, %154 : vector<1x32xf32>
    %156 = arith.negf %155 : vector<1x32xf32>
    %157 = math.exp %156 : vector<1x32xf32>
    %cst_51 = arith.constant 1.000000e+00 : f32
    %158 = vector.broadcast %cst_51 : f32 to vector<1x32xf32>
    %159 = arith.addf %158, %157 : vector<1x32xf32>
    %160 = arith.divf %158, %159 : vector<1x32xf32>
    %161 = vector.extract_strided_slice %150 {offsets = [0, 32], sizes = [1, 32], strides = [1, 1]} : vector<1x96xf32> to vector<1x32xf32>
    %162 = vector.extract_strided_slice %152 {offsets = [0, 32], sizes = [1, 32], strides = [1, 1]} : vector<1x96xf32> to vector<1x32xf32>
    %163 = arith.addf %161, %162 : vector<1x32xf32>
    %164 = arith.negf %163 : vector<1x32xf32>
    %165 = math.exp %164 : vector<1x32xf32>
    %cst_52 = arith.constant 1.000000e+00 : f32
    %166 = vector.broadcast %cst_52 : f32 to vector<1x32xf32>
    %167 = arith.addf %166, %165 : vector<1x32xf32>
    %168 = arith.divf %166, %167 : vector<1x32xf32>
    %169 = vector.extract_strided_slice %150 {offsets = [0, 64], sizes = [1, 32], strides = [1, 1]} : vector<1x96xf32> to vector<1x32xf32>
    %170 = vector.extract_strided_slice %152 {offsets = [0, 64], sizes = [1, 32], strides = [1, 1]} : vector<1x96xf32> to vector<1x32xf32>
    %171 = arith.mulf %160, %170 : vector<1x32xf32>
    %172 = arith.addf %169, %171 : vector<1x32xf32>
    %173 = math.tanh %172 : vector<1x32xf32>
    %cst_53 = arith.constant 1.000000e+00 : f32
    %174 = vector.broadcast %cst_53 : f32 to vector<1x32xf32>
    %175 = arith.subf %174, %168 : vector<1x32xf32>
    %176 = arith.mulf %175, %173 : vector<1x32xf32>
    %177 = arith.mulf %168, %113 : vector<1x32xf32>
    %178 = arith.addf %176, %177 : vector<1x32xf32>
    %179 = arith.index_cast %148 : i32 to index
    %c0_54 = arith.constant 0 : index
    %180 = vector.load %arg22[%179, %c0_54] : memref<8x96xf32, #tpu.memory_space<vmem>>, vector<1x96xf32>
    %cst_55 = arith.constant dense<0.000000e+00> : vector<1x96xf32>
    %181 = tpu.matmul %143, %15, %cst_55 {dimension_numbers = #tpu.dot_dimension_numbers<[1], [0], [0], [1], [0, 0, 1, 1], [], []>} : vector<1x32xf32>, vector<32x96xf32>, vector<1x96xf32> -> vector<1x96xf32>
    %182 = arith.addf %181, %16 : vector<1x96xf32>
    %183 = vector.extract_strided_slice %180 {offsets = [0, 0], sizes = [1, 32], strides = [1, 1]} : vector<1x96xf32> to vector<1x32xf32>
    %184 = vector.extract_strided_slice %182 {offsets = [0, 0], sizes = [1, 32], strides = [1, 1]} : vector<1x96xf32> to vector<1x32xf32>
    %185 = arith.addf %183, %184 : vector<1x32xf32>
    %186 = arith.negf %185 : vector<1x32xf32>
    %187 = math.exp %186 : vector<1x32xf32>
    %cst_56 = arith.constant 1.000000e+00 : f32
    %188 = vector.broadcast %cst_56 : f32 to vector<1x32xf32>
    %189 = arith.addf %188, %187 : vector<1x32xf32>
    %190 = arith.divf %188, %189 : vector<1x32xf32>
    %191 = vector.extract_strided_slice %180 {offsets = [0, 32], sizes = [1, 32], strides = [1, 1]} : vector<1x96xf32> to vector<1x32xf32>
    %192 = vector.extract_strided_slice %182 {offsets = [0, 32], sizes = [1, 32], strides = [1, 1]} : vector<1x96xf32> to vector<1x32xf32>
    %193 = arith.addf %191, %192 : vector<1x32xf32>
    %194 = arith.negf %193 : vector<1x32xf32>
    %195 = math.exp %194 : vector<1x32xf32>
    %cst_57 = arith.constant 1.000000e+00 : f32
    %196 = vector.broadcast %cst_57 : f32 to vector<1x32xf32>
    %197 = arith.addf %196, %195 : vector<1x32xf32>
    %198 = arith.divf %196, %197 : vector<1x32xf32>
    %199 = vector.extract_strided_slice %180 {offsets = [0, 64], sizes = [1, 32], strides = [1, 1]} : vector<1x96xf32> to vector<1x32xf32>
    %200 = vector.extract_strided_slice %182 {offsets = [0, 64], sizes = [1, 32], strides = [1, 1]} : vector<1x96xf32> to vector<1x32xf32>
    %201 = arith.mulf %190, %200 : vector<1x32xf32>
    %202 = arith.addf %199, %201 : vector<1x32xf32>
    %203 = math.tanh %202 : vector<1x32xf32>
    %cst_58 = arith.constant 1.000000e+00 : f32
    %204 = vector.broadcast %cst_58 : f32 to vector<1x32xf32>
    %205 = arith.subf %204, %198 : vector<1x32xf32>
    %206 = arith.mulf %205, %203 : vector<1x32xf32>
    %207 = arith.mulf %198, %143 : vector<1x32xf32>
    %208 = arith.addf %206, %207 : vector<1x32xf32>
    %209 = arith.index_cast %c2_i32 : i32 to index
    %c0_59 = arith.constant 0 : index
    %210 = vector.load %arg23[%209, %c0_59] : memref<8x32xf32, #tpu.memory_space<vmem>>, vector<1x32xf32>
    tpu.vector_store %arg23[%209, %c0_59], %178 {strides = array<i32>} : memref<8x32xf32, #tpu.memory_space<vmem>>, vector<1x32xf32>,
    %211 = arith.index_cast %148 : i32 to index
    %c0_60 = arith.constant 0 : index
    %212 = vector.load %arg24[%211, %c0_60] : memref<8x32xf32, #tpu.memory_space<vmem>>, vector<1x32xf32>
    tpu.vector_store %arg24[%211, %c0_60], %208 {strides = array<i32>} : memref<8x32xf32, #tpu.memory_space<vmem>>, vector<1x32xf32>,
    %c3_i32 = arith.constant 3 : i32
    %c7_i32_61 = arith.constant 7 : i32
    %213 = arith.subi %c7_i32_61, %c3_i32 : i32
    %214 = arith.index_cast %c3_i32 : i32 to index
    %c0_62 = arith.constant 0 : index
    %215 = vector.load %arg21[%214, %c0_62] : memref<8x96xf32, #tpu.memory_space<vmem>>, vector<1x96xf32>
    %cst_63 = arith.constant dense<0.000000e+00> : vector<1x96xf32>
    %216 = tpu.matmul %178, %13, %cst_63 {dimension_numbers = #tpu.dot_dimension_numbers<[1], [0], [0], [1], [0, 0, 1, 1], [], []>} : vector<1x32xf32>, vector<32x96xf32>, vector<1x96xf32> -> vector<1x96xf32>
    %217 = arith.addf %216, %14 : vector<1x96xf32>
    %218 = vector.extract_strided_slice %215 {offsets = [0, 0], sizes = [1, 32], strides = [1, 1]} : vector<1x96xf32> to vector<1x32xf32>
    %219 = vector.extract_strided_slice %217 {offsets = [0, 0], sizes = [1, 32], strides = [1, 1]} : vector<1x96xf32> to vector<1x32xf32>
    %220 = arith.addf %218, %219 : vector<1x32xf32>
    %221 = arith.negf %220 : vector<1x32xf32>
    %222 = math.exp %221 : vector<1x32xf32>
    %cst_64 = arith.constant 1.000000e+00 : f32
    %223 = vector.broadcast %cst_64 : f32 to vector<1x32xf32>
    %224 = arith.addf %223, %222 : vector<1x32xf32>
    %225 = arith.divf %223, %224 : vector<1x32xf32>
    %226 = vector.extract_strided_slice %215 {offsets = [0, 32], sizes = [1, 32], strides = [1, 1]} : vector<1x96xf32> to vector<1x32xf32>
    %227 = vector.extract_strided_slice %217 {offsets = [0, 32], sizes = [1, 32], strides = [1, 1]} : vector<1x96xf32> to vector<1x32xf32>
    %228 = arith.addf %226, %227 : vector<1x32xf32>
    %229 = arith.negf %228 : vector<1x32xf32>
    %230 = math.exp %229 : vector<1x32xf32>
    %cst_65 = arith.constant 1.000000e+00 : f32
    %231 = vector.broadcast %cst_65 : f32 to vector<1x32xf32>
    %232 = arith.addf %231, %230 : vector<1x32xf32>
    %233 = arith.divf %231, %232 : vector<1x32xf32>
    %234 = vector.extract_strided_slice %215 {offsets = [0, 64], sizes = [1, 32], strides = [1, 1]} : vector<1x96xf32> to vector<1x32xf32>
    %235 = vector.extract_strided_slice %217 {offsets = [0, 64], sizes = [1, 32], strides = [1, 1]} : vector<1x96xf32> to vector<1x32xf32>
    %236 = arith.mulf %225, %235 : vector<1x32xf32>
    %237 = arith.addf %234, %236 : vector<1x32xf32>
    %238 = math.tanh %237 : vector<1x32xf32>
    %cst_66 = arith.constant 1.000000e+00 : f32
    %239 = vector.broadcast %cst_66 : f32 to vector<1x32xf32>
    %240 = arith.subf %239, %233 : vector<1x32xf32>
    %241 = arith.mulf %240, %238 : vector<1x32xf32>
    %242 = arith.mulf %233, %178 : vector<1x32xf32>
    %243 = arith.addf %241, %242 : vector<1x32xf32>
    %244 = arith.index_cast %213 : i32 to index
    %c0_67 = arith.constant 0 : index
    %245 = vector.load %arg22[%244, %c0_67] : memref<8x96xf32, #tpu.memory_space<vmem>>, vector<1x96xf32>
    %cst_68 = arith.constant dense<0.000000e+00> : vector<1x96xf32>
    %246 = tpu.matmul %208, %15, %cst_68 {dimension_numbers = #tpu.dot_dimension_numbers<[1], [0], [0], [1], [0, 0, 1, 1], [], []>} : vector<1x32xf32>, vector<32x96xf32>, vector<1x96xf32> -> vector<1x96xf32>
    %247 = arith.addf %246, %16 : vector<1x96xf32>
    %248 = vector.extract_strided_slice %245 {offsets = [0, 0], sizes = [1, 32], strides = [1, 1]} : vector<1x96xf32> to vector<1x32xf32>
    %249 = vector.extract_strided_slice %247 {offsets = [0, 0], sizes = [1, 32], strides = [1, 1]} : vector<1x96xf32> to vector<1x32xf32>
    %250 = arith.addf %248, %249 : vector<1x32xf32>
    %251 = arith.negf %250 : vector<1x32xf32>
    %252 = math.exp %251 : vector<1x32xf32>
    %cst_69 = arith.constant 1.000000e+00 : f32
    %253 = vector.broadcast %cst_69 : f32 to vector<1x32xf32>
    %254 = arith.addf %253, %252 : vector<1x32xf32>
    %255 = arith.divf %253, %254 : vector<1x32xf32>
    %256 = vector.extract_strided_slice %245 {offsets = [0, 32], sizes = [1, 32], strides = [1, 1]} : vector<1x96xf32> to vector<1x32xf32>
    %257 = vector.extract_strided_slice %247 {offsets = [0, 32], sizes = [1, 32], strides = [1, 1]} : vector<1x96xf32> to vector<1x32xf32>
    %258 = arith.addf %256, %257 : vector<1x32xf32>
    %259 = arith.negf %258 : vector<1x32xf32>
    %260 = math.exp %259 : vector<1x32xf32>
    %cst_70 = arith.constant 1.000000e+00 : f32
    %261 = vector.broadcast %cst_70 : f32 to vector<1x32xf32>
    %262 = arith.addf %261, %260 : vector<1x32xf32>
    %263 = arith.divf %261, %262 : vector<1x32xf32>
    %264 = vector.extract_strided_slice %245 {offsets = [0, 64], sizes = [1, 32], strides = [1, 1]} : vector<1x96xf32> to vector<1x32xf32>
    %265 = vector.extract_strided_slice %247 {offsets = [0, 64], sizes = [1, 32], strides = [1, 1]} : vector<1x96xf32> to vector<1x32xf32>
    %266 = arith.mulf %255, %265 : vector<1x32xf32>
    %267 = arith.addf %264, %266 : vector<1x32xf32>
    %268 = math.tanh %267 : vector<1x32xf32>
    %cst_71 = arith.constant 1.000000e+00 : f32
    %269 = vector.broadcast %cst_71 : f32 to vector<1x32xf32>
    %270 = arith.subf %269, %263 : vector<1x32xf32>
    %271 = arith.mulf %270, %268 : vector<1x32xf32>
    %272 = arith.mulf %263, %208 : vector<1x32xf32>
    %273 = arith.addf %271, %272 : vector<1x32xf32>
    %274 = arith.index_cast %c3_i32 : i32 to index
    %c0_72 = arith.constant 0 : index
    %275 = vector.load %arg23[%274, %c0_72] : memref<8x32xf32, #tpu.memory_space<vmem>>, vector<1x32xf32>
    tpu.vector_store %arg23[%274, %c0_72], %243 {strides = array<i32>} : memref<8x32xf32, #tpu.memory_space<vmem>>, vector<1x32xf32>,
    %276 = arith.index_cast %213 : i32 to index
    %c0_73 = arith.constant 0 : index
    %277 = vector.load %arg24[%276, %c0_73] : memref<8x32xf32, #tpu.memory_space<vmem>>, vector<1x32xf32>
    tpu.vector_store %arg24[%276, %c0_73], %273 {strides = array<i32>} : memref<8x32xf32, #tpu.memory_space<vmem>>, vector<1x32xf32>,
    %c4_i32 = arith.constant 4 : i32
    %c7_i32_74 = arith.constant 7 : i32
    %278 = arith.subi %c7_i32_74, %c4_i32 : i32
    %279 = arith.index_cast %c4_i32 : i32 to index
    %c0_75 = arith.constant 0 : index
    %280 = vector.load %arg21[%279, %c0_75] : memref<8x96xf32, #tpu.memory_space<vmem>>, vector<1x96xf32>
    %cst_76 = arith.constant dense<0.000000e+00> : vector<1x96xf32>
    %281 = tpu.matmul %243, %13, %cst_76 {dimension_numbers = #tpu.dot_dimension_numbers<[1], [0], [0], [1], [0, 0, 1, 1], [], []>} : vector<1x32xf32>, vector<32x96xf32>, vector<1x96xf32> -> vector<1x96xf32>
    %282 = arith.addf %281, %14 : vector<1x96xf32>
    %283 = vector.extract_strided_slice %280 {offsets = [0, 0], sizes = [1, 32], strides = [1, 1]} : vector<1x96xf32> to vector<1x32xf32>
    %284 = vector.extract_strided_slice %282 {offsets = [0, 0], sizes = [1, 32], strides = [1, 1]} : vector<1x96xf32> to vector<1x32xf32>
    %285 = arith.addf %283, %284 : vector<1x32xf32>
    %286 = arith.negf %285 : vector<1x32xf32>
    %287 = math.exp %286 : vector<1x32xf32>
    %cst_77 = arith.constant 1.000000e+00 : f32
    %288 = vector.broadcast %cst_77 : f32 to vector<1x32xf32>
    %289 = arith.addf %288, %287 : vector<1x32xf32>
    %290 = arith.divf %288, %289 : vector<1x32xf32>
    %291 = vector.extract_strided_slice %280 {offsets = [0, 32], sizes = [1, 32], strides = [1, 1]} : vector<1x96xf32> to vector<1x32xf32>
    %292 = vector.extract_strided_slice %282 {offsets = [0, 32], sizes = [1, 32], strides = [1, 1]} : vector<1x96xf32> to vector<1x32xf32>
    %293 = arith.addf %291, %292 : vector<1x32xf32>
    %294 = arith.negf %293 : vector<1x32xf32>
    %295 = math.exp %294 : vector<1x32xf32>
    %cst_78 = arith.constant 1.000000e+00 : f32
    %296 = vector.broadcast %cst_78 : f32 to vector<1x32xf32>
    %297 = arith.addf %296, %295 : vector<1x32xf32>
    %298 = arith.divf %296, %297 : vector<1x32xf32>
    %299 = vector.extract_strided_slice %280 {offsets = [0, 64], sizes = [1, 32], strides = [1, 1]} : vector<1x96xf32> to vector<1x32xf32>
    %300 = vector.extract_strided_slice %282 {offsets = [0, 64], sizes = [1, 32], strides = [1, 1]} : vector<1x96xf32> to vector<1x32xf32>
    %301 = arith.mulf %290, %300 : vector<1x32xf32>
    %302 = arith.addf %299, %301 : vector<1x32xf32>
    %303 = math.tanh %302 : vector<1x32xf32>
    %cst_79 = arith.constant 1.000000e+00 : f32
    %304 = vector.broadcast %cst_79 : f32 to vector<1x32xf32>
    %305 = arith.subf %304, %298 : vector<1x32xf32>
    %306 = arith.mulf %305, %303 : vector<1x32xf32>
    %307 = arith.mulf %298, %243 : vector<1x32xf32>
    %308 = arith.addf %306, %307 : vector<1x32xf32>
    %309 = arith.index_cast %278 : i32 to index
    %c0_80 = arith.constant 0 : index
    %310 = vector.load %arg22[%309, %c0_80] : memref<8x96xf32, #tpu.memory_space<vmem>>, vector<1x96xf32>
    %cst_81 = arith.constant dense<0.000000e+00> : vector<1x96xf32>
    %311 = tpu.matmul %273, %15, %cst_81 {dimension_numbers = #tpu.dot_dimension_numbers<[1], [0], [0], [1], [0, 0, 1, 1], [], []>} : vector<1x32xf32>, vector<32x96xf32>, vector<1x96xf32> -> vector<1x96xf32>
    %312 = arith.addf %311, %16 : vector<1x96xf32>
    %313 = vector.extract_strided_slice %310 {offsets = [0, 0], sizes = [1, 32], strides = [1, 1]} : vector<1x96xf32> to vector<1x32xf32>
    %314 = vector.extract_strided_slice %312 {offsets = [0, 0], sizes = [1, 32], strides = [1, 1]} : vector<1x96xf32> to vector<1x32xf32>
    %315 = arith.addf %313, %314 : vector<1x32xf32>
    %316 = arith.negf %315 : vector<1x32xf32>
    %317 = math.exp %316 : vector<1x32xf32>
    %cst_82 = arith.constant 1.000000e+00 : f32
    %318 = vector.broadcast %cst_82 : f32 to vector<1x32xf32>
    %319 = arith.addf %318, %317 : vector<1x32xf32>
    %320 = arith.divf %318, %319 : vector<1x32xf32>
    %321 = vector.extract_strided_slice %310 {offsets = [0, 32], sizes = [1, 32], strides = [1, 1]} : vector<1x96xf32> to vector<1x32xf32>
    %322 = vector.extract_strided_slice %312 {offsets = [0, 32], sizes = [1, 32], strides = [1, 1]} : vector<1x96xf32> to vector<1x32xf32>
    %323 = arith.addf %321, %322 : vector<1x32xf32>
    %324 = arith.negf %323 : vector<1x32xf32>
    %325 = math.exp %324 : vector<1x32xf32>
    %cst_83 = arith.constant 1.000000e+00 : f32
    %326 = vector.broadcast %cst_83 : f32 to vector<1x32xf32>
    %327 = arith.addf %326, %325 : vector<1x32xf32>
    %328 = arith.divf %326, %327 : vector<1x32xf32>
    %329 = vector.extract_strided_slice %310 {offsets = [0, 64], sizes = [1, 32], strides = [1, 1]} : vector<1x96xf32> to vector<1x32xf32>
    %330 = vector.extract_strided_slice %312 {offsets = [0, 64], sizes = [1, 32], strides = [1, 1]} : vector<1x96xf32> to vector<1x32xf32>
    %331 = arith.mulf %320, %330 : vector<1x32xf32>
    %332 = arith.addf %329, %331 : vector<1x32xf32>
    %333 = math.tanh %332 : vector<1x32xf32>
    %cst_84 = arith.constant 1.000000e+00 : f32
    %334 = vector.broadcast %cst_84 : f32 to vector<1x32xf32>
    %335 = arith.subf %334, %328 : vector<1x32xf32>
    %336 = arith.mulf %335, %333 : vector<1x32xf32>
    %337 = arith.mulf %328, %273 : vector<1x32xf32>
    %338 = arith.addf %336, %337 : vector<1x32xf32>
    %339 = arith.index_cast %c4_i32 : i32 to index
    %c0_85 = arith.constant 0 : index
    %340 = vector.load %arg23[%339, %c0_85] : memref<8x32xf32, #tpu.memory_space<vmem>>, vector<1x32xf32>
    tpu.vector_store %arg23[%339, %c0_85], %308 {strides = array<i32>} : memref<8x32xf32, #tpu.memory_space<vmem>>, vector<1x32xf32>,
    %341 = arith.index_cast %278 : i32 to index
    %c0_86 = arith.constant 0 : index
    %342 = vector.load %arg24[%341, %c0_86] : memref<8x32xf32, #tpu.memory_space<vmem>>, vector<1x32xf32>
    tpu.vector_store %arg24[%341, %c0_86], %338 {strides = array<i32>} : memref<8x32xf32, #tpu.memory_space<vmem>>, vector<1x32xf32>,
    %c5_i32 = arith.constant 5 : i32
    %c7_i32_87 = arith.constant 7 : i32
    %343 = arith.subi %c7_i32_87, %c5_i32 : i32
    %344 = arith.index_cast %c5_i32 : i32 to index
    %c0_88 = arith.constant 0 : index
    %345 = vector.load %arg21[%344, %c0_88] : memref<8x96xf32, #tpu.memory_space<vmem>>, vector<1x96xf32>
    %cst_89 = arith.constant dense<0.000000e+00> : vector<1x96xf32>
    %346 = tpu.matmul %308, %13, %cst_89 {dimension_numbers = #tpu.dot_dimension_numbers<[1], [0], [0], [1], [0, 0, 1, 1], [], []>} : vector<1x32xf32>, vector<32x96xf32>, vector<1x96xf32> -> vector<1x96xf32>
    %347 = arith.addf %346, %14 : vector<1x96xf32>
    %348 = vector.extract_strided_slice %345 {offsets = [0, 0], sizes = [1, 32], strides = [1, 1]} : vector<1x96xf32> to vector<1x32xf32>
    %349 = vector.extract_strided_slice %347 {offsets = [0, 0], sizes = [1, 32], strides = [1, 1]} : vector<1x96xf32> to vector<1x32xf32>
    %350 = arith.addf %348, %349 : vector<1x32xf32>
    %351 = arith.negf %350 : vector<1x32xf32>
    %352 = math.exp %351 : vector<1x32xf32>
    %cst_90 = arith.constant 1.000000e+00 : f32
    %353 = vector.broadcast %cst_90 : f32 to vector<1x32xf32>
    %354 = arith.addf %353, %352 : vector<1x32xf32>
    %355 = arith.divf %353, %354 : vector<1x32xf32>
    %356 = vector.extract_strided_slice %345 {offsets = [0, 32], sizes = [1, 32], strides = [1, 1]} : vector<1x96xf32> to vector<1x32xf32>
    %357 = vector.extract_strided_slice %347 {offsets = [0, 32], sizes = [1, 32], strides = [1, 1]} : vector<1x96xf32> to vector<1x32xf32>
    %358 = arith.addf %356, %357 : vector<1x32xf32>
    %359 = arith.negf %358 : vector<1x32xf32>
    %360 = math.exp %359 : vector<1x32xf32>
    %cst_91 = arith.constant 1.000000e+00 : f32
    %361 = vector.broadcast %cst_91 : f32 to vector<1x32xf32>
    %362 = arith.addf %361, %360 : vector<1x32xf32>
    %363 = arith.divf %361, %362 : vector<1x32xf32>
    %364 = vector.extract_strided_slice %345 {offsets = [0, 64], sizes = [1, 32], strides = [1, 1]} : vector<1x96xf32> to vector<1x32xf32>
    %365 = vector.extract_strided_slice %347 {offsets = [0, 64], sizes = [1, 32], strides = [1, 1]} : vector<1x96xf32> to vector<1x32xf32>
    %366 = arith.mulf %355, %365 : vector<1x32xf32>
    %367 = arith.addf %364, %366 : vector<1x32xf32>
    %368 = math.tanh %367 : vector<1x32xf32>
    %cst_92 = arith.constant 1.000000e+00 : f32
    %369 = vector.broadcast %cst_92 : f32 to vector<1x32xf32>
    %370 = arith.subf %369, %363 : vector<1x32xf32>
    %371 = arith.mulf %370, %368 : vector<1x32xf32>
    %372 = arith.mulf %363, %308 : vector<1x32xf32>
    %373 = arith.addf %371, %372 : vector<1x32xf32>
    %374 = arith.index_cast %343 : i32 to index
    %c0_93 = arith.constant 0 : index
    %375 = vector.load %arg22[%374, %c0_93] : memref<8x96xf32, #tpu.memory_space<vmem>>, vector<1x96xf32>
    %cst_94 = arith.constant dense<0.000000e+00> : vector<1x96xf32>
    %376 = tpu.matmul %338, %15, %cst_94 {dimension_numbers = #tpu.dot_dimension_numbers<[1], [0], [0], [1], [0, 0, 1, 1], [], []>} : vector<1x32xf32>, vector<32x96xf32>, vector<1x96xf32> -> vector<1x96xf32>
    %377 = arith.addf %376, %16 : vector<1x96xf32>
    %378 = vector.extract_strided_slice %375 {offsets = [0, 0], sizes = [1, 32], strides = [1, 1]} : vector<1x96xf32> to vector<1x32xf32>
    %379 = vector.extract_strided_slice %377 {offsets = [0, 0], sizes = [1, 32], strides = [1, 1]} : vector<1x96xf32> to vector<1x32xf32>
    %380 = arith.addf %378, %379 : vector<1x32xf32>
    %381 = arith.negf %380 : vector<1x32xf32>
    %382 = math.exp %381 : vector<1x32xf32>
    %cst_95 = arith.constant 1.000000e+00 : f32
    %383 = vector.broadcast %cst_95 : f32 to vector<1x32xf32>
    %384 = arith.addf %383, %382 : vector<1x32xf32>
    %385 = arith.divf %383, %384 : vector<1x32xf32>
    %386 = vector.extract_strided_slice %375 {offsets = [0, 32], sizes = [1, 32], strides = [1, 1]} : vector<1x96xf32> to vector<1x32xf32>
    %387 = vector.extract_strided_slice %377 {offsets = [0, 32], sizes = [1, 32], strides = [1, 1]} : vector<1x96xf32> to vector<1x32xf32>
    %388 = arith.addf %386, %387 : vector<1x32xf32>
    %389 = arith.negf %388 : vector<1x32xf32>
    %390 = math.exp %389 : vector<1x32xf32>
    %cst_96 = arith.constant 1.000000e+00 : f32
    %391 = vector.broadcast %cst_96 : f32 to vector<1x32xf32>
    %392 = arith.addf %391, %390 : vector<1x32xf32>
    %393 = arith.divf %391, %392 : vector<1x32xf32>
    %394 = vector.extract_strided_slice %375 {offsets = [0, 64], sizes = [1, 32], strides = [1, 1]} : vector<1x96xf32> to vector<1x32xf32>
    %395 = vector.extract_strided_slice %377 {offsets = [0, 64], sizes = [1, 32], strides = [1, 1]} : vector<1x96xf32> to vector<1x32xf32>
    %396 = arith.mulf %385, %395 : vector<1x32xf32>
    %397 = arith.addf %394, %396 : vector<1x32xf32>
    %398 = math.tanh %397 : vector<1x32xf32>
    %cst_97 = arith.constant 1.000000e+00 : f32
    %399 = vector.broadcast %cst_97 : f32 to vector<1x32xf32>
    %400 = arith.subf %399, %393 : vector<1x32xf32>
    %401 = arith.mulf %400, %398 : vector<1x32xf32>
    %402 = arith.mulf %393, %338 : vector<1x32xf32>
    %403 = arith.addf %401, %402 : vector<1x32xf32>
    %404 = arith.index_cast %c5_i32 : i32 to index
    %c0_98 = arith.constant 0 : index
    %405 = vector.load %arg23[%404, %c0_98] : memref<8x32xf32, #tpu.memory_space<vmem>>, vector<1x32xf32>
    tpu.vector_store %arg23[%404, %c0_98], %373 {strides = array<i32>} : memref<8x32xf32, #tpu.memory_space<vmem>>, vector<1x32xf32>,
    %406 = arith.index_cast %343 : i32 to index
    %c0_99 = arith.constant 0 : index
    %407 = vector.load %arg24[%406, %c0_99] : memref<8x32xf32, #tpu.memory_space<vmem>>, vector<1x32xf32>
    tpu.vector_store %arg24[%406, %c0_99], %403 {strides = array<i32>} : memref<8x32xf32, #tpu.memory_space<vmem>>, vector<1x32xf32>,
    %c6_i32 = arith.constant 6 : i32
    %c7_i32_100 = arith.constant 7 : i32
    %408 = arith.subi %c7_i32_100, %c6_i32 : i32
    %409 = arith.index_cast %c6_i32 : i32 to index
    %c0_101 = arith.constant 0 : index
    %410 = vector.load %arg21[%409, %c0_101] : memref<8x96xf32, #tpu.memory_space<vmem>>, vector<1x96xf32>
    %cst_102 = arith.constant dense<0.000000e+00> : vector<1x96xf32>
    %411 = tpu.matmul %373, %13, %cst_102 {dimension_numbers = #tpu.dot_dimension_numbers<[1], [0], [0], [1], [0, 0, 1, 1], [], []>} : vector<1x32xf32>, vector<32x96xf32>, vector<1x96xf32> -> vector<1x96xf32>
    %412 = arith.addf %411, %14 : vector<1x96xf32>
    %413 = vector.extract_strided_slice %410 {offsets = [0, 0], sizes = [1, 32], strides = [1, 1]} : vector<1x96xf32> to vector<1x32xf32>
    %414 = vector.extract_strided_slice %412 {offsets = [0, 0], sizes = [1, 32], strides = [1, 1]} : vector<1x96xf32> to vector<1x32xf32>
    %415 = arith.addf %413, %414 : vector<1x32xf32>
    %416 = arith.negf %415 : vector<1x32xf32>
    %417 = math.exp %416 : vector<1x32xf32>
    %cst_103 = arith.constant 1.000000e+00 : f32
    %418 = vector.broadcast %cst_103 : f32 to vector<1x32xf32>
    %419 = arith.addf %418, %417 : vector<1x32xf32>
    %420 = arith.divf %418, %419 : vector<1x32xf32>
    %421 = vector.extract_strided_slice %410 {offsets = [0, 32], sizes = [1, 32], strides = [1, 1]} : vector<1x96xf32> to vector<1x32xf32>
    %422 = vector.extract_strided_slice %412 {offsets = [0, 32], sizes = [1, 32], strides = [1, 1]} : vector<1x96xf32> to vector<1x32xf32>
    %423 = arith.addf %421, %422 : vector<1x32xf32>
    %424 = arith.negf %423 : vector<1x32xf32>
    %425 = math.exp %424 : vector<1x32xf32>
    %cst_104 = arith.constant 1.000000e+00 : f32
    %426 = vector.broadcast %cst_104 : f32 to vector<1x32xf32>
    %427 = arith.addf %426, %425 : vector<1x32xf32>
    %428 = arith.divf %426, %427 : vector<1x32xf32>
    %429 = vector.extract_strided_slice %410 {offsets = [0, 64], sizes = [1, 32], strides = [1, 1]} : vector<1x96xf32> to vector<1x32xf32>
    %430 = vector.extract_strided_slice %412 {offsets = [0, 64], sizes = [1, 32], strides = [1, 1]} : vector<1x96xf32> to vector<1x32xf32>
    %431 = arith.mulf %420, %430 : vector<1x32xf32>
    %432 = arith.addf %429, %431 : vector<1x32xf32>
    %433 = math.tanh %432 : vector<1x32xf32>
    %cst_105 = arith.constant 1.000000e+00 : f32
    %434 = vector.broadcast %cst_105 : f32 to vector<1x32xf32>
    %435 = arith.subf %434, %428 : vector<1x32xf32>
    %436 = arith.mulf %435, %433 : vector<1x32xf32>
    %437 = arith.mulf %428, %373 : vector<1x32xf32>
    %438 = arith.addf %436, %437 : vector<1x32xf32>
    %439 = arith.index_cast %408 : i32 to index
    %c0_106 = arith.constant 0 : index
    %440 = vector.load %arg22[%439, %c0_106] : memref<8x96xf32, #tpu.memory_space<vmem>>, vector<1x96xf32>
    %cst_107 = arith.constant dense<0.000000e+00> : vector<1x96xf32>
    %441 = tpu.matmul %403, %15, %cst_107 {dimension_numbers = #tpu.dot_dimension_numbers<[1], [0], [0], [1], [0, 0, 1, 1], [], []>} : vector<1x32xf32>, vector<32x96xf32>, vector<1x96xf32> -> vector<1x96xf32>
    %442 = arith.addf %441, %16 : vector<1x96xf32>
    %443 = vector.extract_strided_slice %440 {offsets = [0, 0], sizes = [1, 32], strides = [1, 1]} : vector<1x96xf32> to vector<1x32xf32>
    %444 = vector.extract_strided_slice %442 {offsets = [0, 0], sizes = [1, 32], strides = [1, 1]} : vector<1x96xf32> to vector<1x32xf32>
    %445 = arith.addf %443, %444 : vector<1x32xf32>
    %446 = arith.negf %445 : vector<1x32xf32>
    %447 = math.exp %446 : vector<1x32xf32>
    %cst_108 = arith.constant 1.000000e+00 : f32
    %448 = vector.broadcast %cst_108 : f32 to vector<1x32xf32>
    %449 = arith.addf %448, %447 : vector<1x32xf32>
    %450 = arith.divf %448, %449 : vector<1x32xf32>
    %451 = vector.extract_strided_slice %440 {offsets = [0, 32], sizes = [1, 32], strides = [1, 1]} : vector<1x96xf32> to vector<1x32xf32>
    %452 = vector.extract_strided_slice %442 {offsets = [0, 32], sizes = [1, 32], strides = [1, 1]} : vector<1x96xf32> to vector<1x32xf32>
    %453 = arith.addf %451, %452 : vector<1x32xf32>
    %454 = arith.negf %453 : vector<1x32xf32>
    %455 = math.exp %454 : vector<1x32xf32>
    %cst_109 = arith.constant 1.000000e+00 : f32
    %456 = vector.broadcast %cst_109 : f32 to vector<1x32xf32>
    %457 = arith.addf %456, %455 : vector<1x32xf32>
    %458 = arith.divf %456, %457 : vector<1x32xf32>
    %459 = vector.extract_strided_slice %440 {offsets = [0, 64], sizes = [1, 32], strides = [1, 1]} : vector<1x96xf32> to vector<1x32xf32>
    %460 = vector.extract_strided_slice %442 {offsets = [0, 64], sizes = [1, 32], strides = [1, 1]} : vector<1x96xf32> to vector<1x32xf32>
    %461 = arith.mulf %450, %460 : vector<1x32xf32>
    %462 = arith.addf %459, %461 : vector<1x32xf32>
    %463 = math.tanh %462 : vector<1x32xf32>
    %cst_110 = arith.constant 1.000000e+00 : f32
    %464 = vector.broadcast %cst_110 : f32 to vector<1x32xf32>
    %465 = arith.subf %464, %458 : vector<1x32xf32>
    %466 = arith.mulf %465, %463 : vector<1x32xf32>
    %467 = arith.mulf %458, %403 : vector<1x32xf32>
    %468 = arith.addf %466, %467 : vector<1x32xf32>
    %469 = arith.index_cast %c6_i32 : i32 to index
    %c0_111 = arith.constant 0 : index
    %470 = vector.load %arg23[%469, %c0_111] : memref<8x32xf32, #tpu.memory_space<vmem>>, vector<1x32xf32>
    tpu.vector_store %arg23[%469, %c0_111], %438 {strides = array<i32>} : memref<8x32xf32, #tpu.memory_space<vmem>>, vector<1x32xf32>,
    %471 = arith.index_cast %408 : i32 to index
    %c0_112 = arith.constant 0 : index
    %472 = vector.load %arg24[%471, %c0_112] : memref<8x32xf32, #tpu.memory_space<vmem>>, vector<1x32xf32>
    tpu.vector_store %arg24[%471, %c0_112], %468 {strides = array<i32>} : memref<8x32xf32, #tpu.memory_space<vmem>>, vector<1x32xf32>,
    %c7_i32_113 = arith.constant 7 : i32
    %c7_i32_114 = arith.constant 7 : i32
    %473 = arith.subi %c7_i32_114, %c7_i32_113 : i32
    %474 = arith.index_cast %c7_i32_113 : i32 to index
    %c0_115 = arith.constant 0 : index
    %475 = vector.load %arg21[%474, %c0_115] : memref<8x96xf32, #tpu.memory_space<vmem>>, vector<1x96xf32>
    %cst_116 = arith.constant dense<0.000000e+00> : vector<1x96xf32>
    %476 = tpu.matmul %438, %13, %cst_116 {dimension_numbers = #tpu.dot_dimension_numbers<[1], [0], [0], [1], [0, 0, 1, 1], [], []>} : vector<1x32xf32>, vector<32x96xf32>, vector<1x96xf32> -> vector<1x96xf32>
    %477 = arith.addf %476, %14 : vector<1x96xf32>
    %478 = vector.extract_strided_slice %475 {offsets = [0, 0], sizes = [1, 32], strides = [1, 1]} : vector<1x96xf32> to vector<1x32xf32>
    %479 = vector.extract_strided_slice %477 {offsets = [0, 0], sizes = [1, 32], strides = [1, 1]} : vector<1x96xf32> to vector<1x32xf32>
    %480 = arith.addf %478, %479 : vector<1x32xf32>
    %481 = arith.negf %480 : vector<1x32xf32>
    %482 = math.exp %481 : vector<1x32xf32>
    %cst_117 = arith.constant 1.000000e+00 : f32
    %483 = vector.broadcast %cst_117 : f32 to vector<1x32xf32>
    %484 = arith.addf %483, %482 : vector<1x32xf32>
    %485 = arith.divf %483, %484 : vector<1x32xf32>
    %486 = vector.extract_strided_slice %475 {offsets = [0, 32], sizes = [1, 32], strides = [1, 1]} : vector<1x96xf32> to vector<1x32xf32>
    %487 = vector.extract_strided_slice %477 {offsets = [0, 32], sizes = [1, 32], strides = [1, 1]} : vector<1x96xf32> to vector<1x32xf32>
    %488 = arith.addf %486, %487 : vector<1x32xf32>
    %489 = arith.negf %488 : vector<1x32xf32>
    %490 = math.exp %489 : vector<1x32xf32>
    %cst_118 = arith.constant 1.000000e+00 : f32
    %491 = vector.broadcast %cst_118 : f32 to vector<1x32xf32>
    %492 = arith.addf %491, %490 : vector<1x32xf32>
    %493 = arith.divf %491, %492 : vector<1x32xf32>
    %494 = vector.extract_strided_slice %475 {offsets = [0, 64], sizes = [1, 32], strides = [1, 1]} : vector<1x96xf32> to vector<1x32xf32>
    %495 = vector.extract_strided_slice %477 {offsets = [0, 64], sizes = [1, 32], strides = [1, 1]} : vector<1x96xf32> to vector<1x32xf32>
    %496 = arith.mulf %485, %495 : vector<1x32xf32>
    %497 = arith.addf %494, %496 : vector<1x32xf32>
    %498 = math.tanh %497 : vector<1x32xf32>
    %cst_119 = arith.constant 1.000000e+00 : f32
    %499 = vector.broadcast %cst_119 : f32 to vector<1x32xf32>
    %500 = arith.subf %499, %493 : vector<1x32xf32>
    %501 = arith.mulf %500, %498 : vector<1x32xf32>
    %502 = arith.mulf %493, %438 : vector<1x32xf32>
    %503 = arith.addf %501, %502 : vector<1x32xf32>
    %504 = arith.index_cast %473 : i32 to index
    %c0_120 = arith.constant 0 : index
    %505 = vector.load %arg22[%504, %c0_120] : memref<8x96xf32, #tpu.memory_space<vmem>>, vector<1x96xf32>
    %cst_121 = arith.constant dense<0.000000e+00> : vector<1x96xf32>
    %506 = tpu.matmul %468, %15, %cst_121 {dimension_numbers = #tpu.dot_dimension_numbers<[1], [0], [0], [1], [0, 0, 1, 1], [], []>} : vector<1x32xf32>, vector<32x96xf32>, vector<1x96xf32> -> vector<1x96xf32>
    %507 = arith.addf %506, %16 : vector<1x96xf32>
    %508 = vector.extract_strided_slice %505 {offsets = [0, 0], sizes = [1, 32], strides = [1, 1]} : vector<1x96xf32> to vector<1x32xf32>
    %509 = vector.extract_strided_slice %507 {offsets = [0, 0], sizes = [1, 32], strides = [1, 1]} : vector<1x96xf32> to vector<1x32xf32>
    %510 = arith.addf %508, %509 : vector<1x32xf32>
    %511 = arith.negf %510 : vector<1x32xf32>
    %512 = math.exp %511 : vector<1x32xf32>
    %cst_122 = arith.constant 1.000000e+00 : f32
    %513 = vector.broadcast %cst_122 : f32 to vector<1x32xf32>
    %514 = arith.addf %513, %512 : vector<1x32xf32>
    %515 = arith.divf %513, %514 : vector<1x32xf32>
    %516 = vector.extract_strided_slice %505 {offsets = [0, 32], sizes = [1, 32], strides = [1, 1]} : vector<1x96xf32> to vector<1x32xf32>
    %517 = vector.extract_strided_slice %507 {offsets = [0, 32], sizes = [1, 32], strides = [1, 1]} : vector<1x96xf32> to vector<1x32xf32>
    %518 = arith.addf %516, %517 : vector<1x32xf32>
    %519 = arith.negf %518 : vector<1x32xf32>
    %520 = math.exp %519 : vector<1x32xf32>
    %cst_123 = arith.constant 1.000000e+00 : f32
    %521 = vector.broadcast %cst_123 : f32 to vector<1x32xf32>
    %522 = arith.addf %521, %520 : vector<1x32xf32>
    %523 = arith.divf %521, %522 : vector<1x32xf32>
    %524 = vector.extract_strided_slice %505 {offsets = [0, 64], sizes = [1, 32], strides = [1, 1]} : vector<1x96xf32> to vector<1x32xf32>
    %525 = vector.extract_strided_slice %507 {offsets = [0, 64], sizes = [1, 32], strides = [1, 1]} : vector<1x96xf32> to vector<1x32xf32>
    %526 = arith.mulf %515, %525 : vector<1x32xf32>
    %527 = arith.addf %524, %526 : vector<1x32xf32>
    %528 = math.tanh %527 : vector<1x32xf32>
    %cst_124 = arith.constant 1.000000e+00 : f32
    %529 = vector.broadcast %cst_124 : f32 to vector<1x32xf32>
    %530 = arith.subf %529, %523 : vector<1x32xf32>
    %531 = arith.mulf %530, %528 : vector<1x32xf32>
    %532 = arith.mulf %523, %468 : vector<1x32xf32>
    %533 = arith.addf %531, %532 : vector<1x32xf32>
    %534 = arith.index_cast %c7_i32_113 : i32 to index
    %c0_125 = arith.constant 0 : index
    %535 = vector.load %arg23[%534, %c0_125] : memref<8x32xf32, #tpu.memory_space<vmem>>, vector<1x32xf32>
    tpu.vector_store %arg23[%534, %c0_125], %503 {strides = array<i32>} : memref<8x32xf32, #tpu.memory_space<vmem>>, vector<1x32xf32>,
    %536 = arith.index_cast %473 : i32 to index
    %c0_126 = arith.constant 0 : index
    %537 = vector.load %arg24[%536, %c0_126] : memref<8x32xf32, #tpu.memory_space<vmem>>, vector<1x32xf32>
    tpu.vector_store %arg24[%536, %c0_126], %533 {strides = array<i32>} : memref<8x32xf32, #tpu.memory_space<vmem>>, vector<1x32xf32>,
    %c8_i32 = arith.constant 8 : i32
    %c0_127 = arith.constant 0 : index
    %538 = memref.load %arg1[%c0_127] : memref<1xi32, #tpu.memory_space<smem>>
    %539 = arith.index_cast %538 : i32 to index
    %c0_128 = arith.constant 0 : index
    %540 = vector.load %arg23[%539, %c0_128] : memref<8x32xf32, #tpu.memory_space<vmem>>, vector<1x32xf32>
    %541 = arith.index_cast %538 : i32 to index
    %c0_129 = arith.constant 0 : index
    %542 = vector.load %arg24[%541, %c0_129] : memref<8x32xf32, #tpu.memory_space<vmem>>, vector<1x32xf32>
    %c0_130 = arith.constant 0 : index
    %c0_131 = arith.constant 0 : index
    %543 = vector.load %arg10[%c0_130, %c0_131] : memref<32x96xf32, #tpu.memory_space<vmem>>, vector<32x96xf32>
    %cst_132 = arith.constant dense<0.000000e+00> : vector<1x96xf32>
    %544 = tpu.matmul %540, %543, %cst_132 {dimension_numbers = #tpu.dot_dimension_numbers<[1], [0], [0], [1], [0, 0, 1, 1], [], []>} : vector<1x32xf32>, vector<32x96xf32>, vector<1x96xf32> -> vector<1x96xf32>
    %c0_133 = arith.constant 0 : index
    %c0_134 = arith.constant 0 : index
    %545 = vector.load %arg11[%c0_133, %c0_134] : memref<32x96xf32, #tpu.memory_space<vmem>>, vector<32x96xf32>
    %cst_135 = arith.constant dense<0.000000e+00> : vector<1x96xf32>
    %546 = tpu.matmul %542, %545, %cst_135 {dimension_numbers = #tpu.dot_dimension_numbers<[1], [0], [0], [1], [0, 0, 1, 1], [], []>} : vector<1x32xf32>, vector<32x96xf32>, vector<1x96xf32> -> vector<1x96xf32>
    %547 = arith.addf %544, %546 : vector<1x96xf32>
    %c0_136 = arith.constant 0 : index
    %c0_137 = arith.constant 0 : index
    %548 = vector.load %arg12[%c0_136, %c0_137] : memref<1x96xf32, #tpu.memory_space<vmem>>, vector<1x96xf32>
    %549 = arith.addf %547, %548 : vector<1x96xf32>
    %c0_138 = arith.constant 0 : index
    %c0_139 = arith.constant 0 : index
    %550 = vector.load %arg13[%c0_138, %c0_139] : memref<1x96xf32, #tpu.memory_space<vmem>>, vector<1x96xf32>
    %551 = vector.extract_strided_slice %549 {offsets = [0, 0], sizes = [1, 32], strides = [1, 1]} : vector<1x96xf32> to vector<1x32xf32>
    %552 = vector.extract_strided_slice %550 {offsets = [0, 0], sizes = [1, 32], strides = [1, 1]} : vector<1x96xf32> to vector<1x32xf32>
    %553 = arith.addf %551, %552 : vector<1x32xf32>
    %554 = arith.negf %553 : vector<1x32xf32>
    %555 = math.exp %554 : vector<1x32xf32>
    %cst_140 = arith.constant 1.000000e+00 : f32
    %556 = vector.broadcast %cst_140 : f32 to vector<1x32xf32>
    %557 = arith.addf %556, %555 : vector<1x32xf32>
    %558 = arith.divf %556, %557 : vector<1x32xf32>
    %559 = vector.extract_strided_slice %549 {offsets = [0, 32], sizes = [1, 32], strides = [1, 1]} : vector<1x96xf32> to vector<1x32xf32>
    %560 = vector.extract_strided_slice %550 {offsets = [0, 32], sizes = [1, 32], strides = [1, 1]} : vector<1x96xf32> to vector<1x32xf32>
    %561 = arith.addf %559, %560 : vector<1x32xf32>
    %562 = arith.negf %561 : vector<1x32xf32>
    %563 = math.exp %562 : vector<1x32xf32>
    %cst_141 = arith.constant 1.000000e+00 : f32
    %564 = vector.broadcast %cst_141 : f32 to vector<1x32xf32>
    %565 = arith.addf %564, %563 : vector<1x32xf32>
    %566 = arith.divf %564, %565 : vector<1x32xf32>
    %567 = vector.extract_strided_slice %549 {offsets = [0, 64], sizes = [1, 32], strides = [1, 1]} : vector<1x96xf32> to vector<1x32xf32>
    %568 = vector.extract_strided_slice %550 {offsets = [0, 64], sizes = [1, 32], strides = [1, 1]} : vector<1x96xf32> to vector<1x32xf32>
    %569 = arith.mulf %558, %568 : vector<1x32xf32>
    %570 = arith.addf %567, %569 : vector<1x32xf32>
    %571 = math.tanh %570 : vector<1x32xf32>
    %cst_142 = arith.constant 1.000000e+00 : f32
    %572 = vector.broadcast %cst_142 : f32 to vector<1x32xf32>
    %573 = arith.subf %572, %566 : vector<1x32xf32>
    %574 = arith.mulf %573, %571 : vector<1x32xf32>
    %c0_143 = arith.constant 0 : index
    %c0_144 = arith.constant 0 : index
    %575 = vector.load %arg23[%c0_143, %c0_144] : memref<8x32xf32, #tpu.memory_space<vmem>>, vector<8x32xf32>
    %c0_145 = arith.constant 0 : index
    %c0_146 = arith.constant 0 : index
    %576 = vector.load %arg14[%c0_145, %c0_146] : memref<32x32xf32, #tpu.memory_space<vmem>>, vector<32x32xf32>
    %cst_147 = arith.constant dense<0.000000e+00> : vector<8x32xf32>
    %577 = tpu.matmul %575, %576, %cst_147 {dimension_numbers = #tpu.dot_dimension_numbers<[1], [0], [0], [1], [0, 0, 1, 1], [], []>} : vector<8x32xf32>, vector<32x32xf32>, vector<8x32xf32> -> vector<8x32xf32>
    %c0_148 = arith.constant 0 : index
    %c0_149 = arith.constant 0 : index
    %578 = vector.load %arg24[%c0_148, %c0_149] : memref<8x32xf32, #tpu.memory_space<vmem>>, vector<8x32xf32>
    %c0_150 = arith.constant 0 : index
    %c0_151 = arith.constant 0 : index
    %579 = vector.load %arg15[%c0_150, %c0_151] : memref<32x32xf32, #tpu.memory_space<vmem>>, vector<32x32xf32>
    %cst_152 = arith.constant dense<0.000000e+00> : vector<8x32xf32>
    %580 = tpu.matmul %578, %579, %cst_152 {dimension_numbers = #tpu.dot_dimension_numbers<[1], [0], [0], [1], [0, 0, 1, 1], [], []>} : vector<8x32xf32>, vector<32x32xf32>, vector<8x32xf32> -> vector<8x32xf32>
    %581 = arith.addf %577, %580 : vector<8x32xf32>
    %c0_153 = arith.constant 0 : index
    %c0_154 = arith.constant 0 : index
    %582 = vector.load %arg16[%c0_153, %c0_154] : memref<1x32xf32, #tpu.memory_space<vmem>>, vector<1x32xf32>
    %583 = vector.broadcast %582 : vector<1x32xf32> to vector<8x32xf32>
    %584 = arith.addf %581, %583 : vector<8x32xf32>
    %c0_155 = arith.constant 0 : index
    %c0_156 = arith.constant 0 : index
    %585 = vector.load %arg17[%c0_155, %c0_156] : memref<32x32xf32, #tpu.memory_space<vmem>>, vector<32x32xf32>
    %cst_157 = arith.constant dense<0.000000e+00> : vector<1x32xf32>
    %586 = tpu.matmul %574, %585, %cst_157 {dimension_numbers = #tpu.dot_dimension_numbers<[1], [0], [0], [1], [0, 0, 1, 1], [], []>} : vector<1x32xf32>, vector<32x32xf32>, vector<1x32xf32> -> vector<1x32xf32>
    %c0_158 = arith.constant 0 : index
    %c0_159 = arith.constant 0 : index
    %587 = vector.load %arg18[%c0_158, %c0_159] : memref<1x32xf32, #tpu.memory_space<vmem>>, vector<1x32xf32>
    %588 = arith.addf %586, %587 : vector<1x32xf32>
    %589 = vector.broadcast %588 : vector<1x32xf32> to vector<8x32xf32>
    %590 = arith.addf %584, %589 : vector<8x32xf32>
    %591 = math.tanh %590 : vector<8x32xf32>
    %c0_160 = arith.constant 0 : index
    %c0_161 = arith.constant 0 : index
    %592 = vector.load %arg19[%c0_160, %c0_161] : memref<1x32xf32, #tpu.memory_space<vmem>>, vector<1x32xf32>
    %593 = vector.broadcast %592 : vector<1x32xf32> to vector<8x32xf32>
    %594 = arith.mulf %591, %593 : vector<8x32xf32>
    %cst_162 = arith.constant dense<0.000000e+00> : vector<8xf32>
    %595 = vector.multi_reduction <add>, %594, %cst_162 [1] : vector<8x32xf32> to vector<8xf32>
    %596 = vector.shape_cast %595 : vector<8xf32> to vector<8x1xf32>
    %597 = vector.shape_cast %596 : vector<8x1xf32> to vector<1x8x1xf32>
    %cst_163 = arith.constant dense<0xFF800000> : vector<1xf32>
    %598 = vector.multi_reduction <maximumf>, %597, %cst_163 [1, 2] : vector<1x8x1xf32> to vector<1xf32>
    %599 = vector.shape_cast %598 : vector<1xf32> to vector<1x1x1xf32>
    %600 = vector.extract %599[0, 0, 0] : f32 from vector<1x1x1xf32>
    %601 = vector.broadcast %600 : f32 to vector<8x1xf32>
    %602 = arith.subf %596, %601 : vector<8x1xf32>
    %603 = math.exp %602 : vector<8x1xf32>
    %604 = vector.shape_cast %603 : vector<8x1xf32> to vector<1x8x1xf32>
    %cst_164 = arith.constant dense<0.000000e+00> : vector<1xf32>
    %605 = vector.multi_reduction <add>, %604, %cst_164 [1, 2] : vector<1x8x1xf32> to vector<1xf32>
    %606 = vector.shape_cast %605 : vector<1xf32> to vector<1x1x1xf32>
    %607 = vector.extract %606[0, 0, 0] : f32 from vector<1x1x1xf32>
    %608 = vector.broadcast %607 : f32 to vector<8x1xf32>
    %609 = arith.divf %603, %608 : vector<8x1xf32>
    %c0_165 = arith.constant 0 : index
    %c0_166 = arith.constant 0 : index
    %610 = vector.load %arg20[%c0_165, %c0_166] : memref<8x1xf32, #tpu.memory_space<vmem>>, vector<8x1xf32>
    tpu.vector_store %arg20[%c0_165, %c0_166], %609 {strides = array<i32>} : memref<8x1xf32, #tpu.memory_space<vmem>>, vector<8x1xf32>,
    return
  }
}

</mosaic_0001>

<bundles_post_ra>
// kernel: tpu_custom_call.1
= control target key start
LH: loop header
LB: loop body
LE: loop exit
PB: predicated region body
PF: predicated region fallthrough
CT: control target
= control target key end

     0   :  { %s3914_s0 = inlined_call_operand.hbm [shape: f32[8,32], index: 0, kind: input, shape index: {}]   ;;  %s3915_s1 = inlined_call_operand.<no memory space> [shape: s32[1], index: 1, kind: input, shape index: {}]   ;;  %s3916_s2 = inlined_call_operand.hbm [shape: f32[32,96], index: 2, kind: input, shape index: {}]   ;;  %s3917_s3 = inlined_call_operand.hbm [shape: f32[32,96], index: 3, kind: input, shape index: {}]   ;;  %s3918_s4 = inlined_call_operand.vmem [shape: f32[1,96], index: 4, kind: input, shape index: {}]   ;;  %s3919_s5 = inlined_call_operand.vmem [shape: f32[1,96], index: 5, kind: input, shape index: {}]   ;;  %s3920_s6 = inlined_call_operand.hbm [shape: f32[32,96], index: 6, kind: input, shape index: {}]   ;;  %s3921_s7 = inlined_call_operand.hbm [shape: f32[32,96], index: 7, kind: input, shape index: {}]   ;;  %s3922_s8 = inlined_call_operand.vmem [shape: f32[1,96], index: 8, kind: input, shape index: {}]   ;;  %s3923_s9 = inlined_call_operand.vmem [shape: f32[1,96], index: 9, kind: input, shape index: {}]   ;;  %s3924_s10 = inlined_call_operand.hbm [shape: f32[32,96], index: 10, kind: input, shape index: {}]   ;;  %s3925_s11 = inlined_call_operand.hbm [shape: f32[32,96], index: 11, kind: input, shape index: {}]   ;;  %s3926_s12 = inlined_call_operand.vmem [shape: f32[1,96], index: 12, kind: input, shape index: {}]   ;;  %s3927_s13 = inlined_call_operand.vmem [shape: f32[1,96], index: 13, kind: input, shape index: {}]   ;;  %s3928_s14 = inlined_call_operand.hbm [shape: f32[32,32], index: 14, kind: input, shape index: {}]   ;;  %s3929_s15 = inlined_call_operand.hbm [shape: f32[32,32], index: 15, kind: input, shape index: {}]   ;;  %s3930_s16 = inlined_call_operand.vmem [shape: f32[1,32], index: 16, kind: input, shape index: {}]   ;;  %s3931_s17 = inlined_call_operand.hbm [shape: f32[32,32], index: 17, kind: input, shape index: {}]   ;;  %s3932_s18 = inlined_call_operand.vmem [shape: f32[1,32], index: 18, kind: input, shape index: {}]   ;;  %s3933_s19 = inlined_call_operand.vmem [shape: f32[1,32], index: 19, kind: input, shape index: {}]   ;;  %s3934_s20 = inlined_call_operand.vmem [shape: f32[8,1], index: 20, kind: output, shape index: {}]  }
   0x1   :  { %3936 = sst [smem:[#allocation29_spill]] %s3914_s0 }
   0x2   :  { %3937 = sst [smem:[#allocation30_spill]] %s3915_s1 }
   0x3   :  { %3938 = sst [smem:[#allocation31_spill]] %s3916_s2 }
   0x4   :  { %3939 = sst [smem:[#allocation32_spill]] %s3917_s3 }
   0x5   :  { %3940 = sst [smem:[#allocation33_spill]] %s3918_s4 }
   0x6   :  { %26 = vsyncpa [#allocation8], 0 }
   0x7   :  { %27 = vsyncpa [#allocation10], 0 }
   0x8   :  { %28 = vsyncpa [#allocation13], 0 }
   0x9   :  { %29 = vsyncpa [#allocation16], 0 }
   0xa   :  { %30 = vsyncpa [#allocation19], 0 }
   0xb   :  { %31 = vsyncpa [#allocation22], 0  ;;  %s3285_s1 = smov [#allocation9]  }
   0xc   :  { %s49_s22 = sshll.u32 %s3285_s1, 4  ;;  %s50_s22 = int_to_ptr.vmem [resolvable:$true] %s49_s22 }
   0xd   :  { %s3081_s23 = scalar_lea.vmem %s50_s22, 512  ;;  %p3086_p1 = scmp.lt.s32.totalorder %s50_s22, %s50_s22 }
   0xe   :  { %p3082_p0 = scmp.ne.s32.totalorder %s50_s22, %s3081_s23  ;;  %p3087_p2 = scmp.lt.s32.totalorder %s3081_s23, %s3081_s23 }
  0x10   :  { %p3088_p3 = por %p3087_p2, %p3086_p1 }
  0x12   :  { %p3089_p4 = pnand %p3088_p3, %p3082_p0 }
  0x14   :  { %3092 = shalt.err (!%p3089_p4)
}
  0x15   :  { %s3286_s24 = smov 128   ;;  %s3287_s2 = smov 8  }
  0x16   :  { %s3941_s26 = sld [smem:[#allocation31_spill]]  ;;  %s3288_s27 = smov [#allocation12]  }
  0x17   :  { %s77_s28 = sshll.u32 %s3288_s27, 4  ;;  %s3289_s4 = smov [#allocation15]   ;;  %s78_s28 = int_to_ptr.vmem [resolvable:$true] %s77_s28 }
  0x18   :  { %s105_s29 = sshll.u32 %s3289_s4, 4  ;;  %s3101_s30 = scalar_lea.vmem %s78_s28, 512  ;;  %s106_s29 = int_to_ptr.vmem [resolvable:$true] %s105_s29 }
  0x19   :  { %p3102_p5 = scmp.ne.s32.totalorder %s78_s28, %s3101_s30  ;;  %p3106_p6 = scmp.lt.s32.totalorder %s78_s28, %s78_s28 }
  0x1a   :  { %p3107_p7 = scmp.lt.s32.totalorder %s3101_s30, %s3101_s30 }
  0x1c   :  { %55 = dma.hbm_to_vmem [thread:$0]  %s3941_s26, 512, %s50_s22, [#allocation10], %s3286_s24, %s3286_s24, %s3287_s2  }
  0x1d   :  { %p3108_p8 = por %p3107_p7, %p3106_p6 }
  0x1f   :  { %p3109_p9 = pnand %p3108_p8, %p3102_p5 }
  0x21   :  { %3112 = shalt.err (!%p3109_p9)
}
  0x22   :  { %83 = dma.hbm_to_vmem [thread:$0]  %s3920_s6, 512, %s78_s28, [#allocation13], %s3286_s24, %s3286_s24, %s3287_s2  }
  0x23   :  { %s3121_s1 = scalar_lea.vmem %s106_s29, 512  ;;  %p3126_p11 = scmp.lt.s32.totalorder %s106_s29, %s106_s29 }
  0x24   :  { %p3122_p10 = scmp.ne.s32.totalorder %s106_s29, %s3121_s1  ;;  %p3127_p12 = scmp.lt.s32.totalorder %s3121_s1, %s3121_s1 }
  0x26   :  { %p3128_p13 = por %p3127_p12, %p3126_p11 }
  0x28   :  { %p3129_p0 = pnand %p3128_p13, %p3122_p10 }
  0x2a   :  { %3132 = shalt.err (!%p3129_p0)
}
  0x2b   :  { %111 = dma.hbm_to_vmem [thread:$0]  %s3924_s10, 512, %s106_s29, [#allocation16], %s3286_s24, %s3286_s24, %s3287_s2  }
  0x2c   :  { %s3290_s25 = smov [#allocation18]   ;;  %s3291_s26 = smov [#allocation7]  }
  0x2d   :  { %s133_s3 = sshll.u32 %s3290_s25, 4  ;;  %s38_s6 = sshll.u32 %s3291_s26, 4  ;;  %s134_s3 = int_to_ptr.vmem [resolvable:$true] %s133_s3  ;;  %s39_s6 = int_to_ptr.vmem [resolvable:$true] %s38_s6 }
  0x2e   :  { %s3141_s27 = scalar_lea.vmem %s134_s3, 512  ;;  %p3146_p2 = scmp.lt.s32.totalorder %s134_s3, %s134_s3 }
  0x2f   :  { %p3142_p1 = scmp.ne.s32.totalorder %s134_s3, %s3141_s27  ;;  %p3147_p3 = scmp.lt.s32.totalorder %s3141_s27, %s3141_s27 }
  0x31   :  { %p3148_p4 = por %p3147_p3, %p3146_p2 }
  0x33   :  { %p3149_p5 = pnand %p3148_p4, %p3142_p1 }
  0x35   :  { %3152 = shalt.err (!%p3149_p5)
}
  0x36   :  { %139 = dma.hbm_to_vmem [thread:$0]  %s3928_s14, 512, %s134_s3, [#allocation19], %s3286_s24, %s3286_s24, %s3287_s2  }
  0x37   :  { %s3161_s10 = scalar_lea.vmem %s39_s6, 128  ;;  %p3166_p7 = scmp.lt.s32.totalorder %s39_s6, %s39_s6 }
  0x38   :  { %p3162_p6 = scmp.ne.s32.totalorder %s39_s6, %s3161_s10  ;;  %p3167_p8 = scmp.lt.s32.totalorder %s3161_s10, %s3161_s10 }
  0x3a   :  { %p3168_p9 = por %p3167_p8, %p3166_p7 }
  0x3c   :  { %p3169_p10 = pnand %p3168_p9, %p3162_p6 }
  0x3e   :  { %3172 = shalt.err (!%p3169_p10)
}
  0x3f   :  { %s3942_s0 = sld [smem:[#allocation29_spill]]  ;;  %s3292_s21 = smov [#allocation11]  }
  0x40   :  { %s61_s1 = sshll.u32 %s3292_s21, 4  ;;  %s3293_s22 = smov [#allocation14]   ;;  %s62_s1 = int_to_ptr.vmem [resolvable:$true] %s61_s1 }
  0x41   :  { %s89_s23 = sshll.u32 %s3293_s22, 4  ;;  %s3181_s25 = scalar_lea.vmem %s62_s1, 512  ;;  %s90_s23 = int_to_ptr.vmem [resolvable:$true] %s89_s23 }
  0x42   :  { %p3182_p11 = scmp.ne.s32.totalorder %s62_s1, %s3181_s25  ;;  %p3186_p12 = scmp.lt.s32.totalorder %s62_s1, %s62_s1 }
  0x43   :  { %p3187_p13 = scmp.lt.s32.totalorder %s3181_s25, %s3181_s25 }
  0x45   :  { %41 = dma.hbm_to_vmem [thread:$0]  %s3942_s0, 128, %s39_s6, [#allocation8]  }
  0x46   :  { %p3188_p0 = por %p3187_p13, %p3186_p12 }
  0x48   :  { %p3189_p1 = pnand %p3188_p0, %p3182_p11 }
  0x4a   :  { %3192 = shalt.err (!%p3189_p1)
}
  0x4b   :  { %s3943_s26 = sld [smem:[#allocation32_spill]]  ;;  %s3201_s6 = scalar_lea.vmem %s90_s23, 512 }
  0x4c   :  { %p3202_p2 = scmp.ne.s32.totalorder %s90_s23, %s3201_s6  ;;  %p3206_p3 = scmp.lt.s32.totalorder %s90_s23, %s90_s23 }
  0x4d   :  { %p3207_p4 = scmp.lt.s32.totalorder %s3201_s6, %s3201_s6 }
  0x4f   :  { %p3208_p5 = por %p3207_p4, %p3206_p3 }
  0x51   :  { %67 = dma.hbm_to_vmem [thread:$0]  %s3943_s26, 512, %s62_s1, [#allocation10], %s3286_s24, %s3286_s24, %s3287_s2  }
  0x52   :  { %p3209_p6 = pnand %p3208_p5, %p3202_p2 }
  0x54   :  { %3212 = shalt.err (!%p3209_p6)
}
  0x55   :  { %95 = dma.hbm_to_vmem [thread:$0]  %s3921_s7, 512, %s90_s23, [#allocation13], %s3286_s24, %s3286_s24, %s3287_s2  }
  0x56   :  { %s3294_s4 = smov [#allocation17]   ;;  %s3295_s29 = smov [#allocation20]  }
  0x57   :  { %s117_s10 = sshll.u32 %s3294_s4, 4  ;;  %s145_s30 = sshll.u32 %s3295_s29, 4  ;;  %s118_s10 = int_to_ptr.vmem [resolvable:$true] %s117_s10  ;;  %s146_s30 = int_to_ptr.vmem [resolvable:$true] %s145_s30 }
  0x58   :  { %s3221_s0 = scalar_lea.vmem %s118_s10, 512  ;;  %p3226_p8 = scmp.lt.s32.totalorder %s118_s10, %s118_s10 }
  0x59   :  { %p3222_p7 = scmp.ne.s32.totalorder %s118_s10, %s3221_s0  ;;  %p3227_p9 = scmp.lt.s32.totalorder %s3221_s0, %s3221_s0 }
  0x5b   :  { %p3228_p10 = por %p3227_p9, %p3226_p8 }
  0x5d   :  { %p3229_p11 = pnand %p3228_p10, %p3222_p7 }
  0x5f   :  { %3232 = shalt.err (!%p3229_p11)
}
  0x60   :  { %123 = dma.hbm_to_vmem [thread:$0]  %s3925_s11, 512, %s118_s10, [#allocation16], %s3286_s24, %s3286_s24, %s3287_s2  }
  0x61   :  { %s3241_s7 = scalar_lea.vmem %s146_s30, 512  ;;  %p3246_p13 = scmp.lt.s32.totalorder %s146_s30, %s146_s30 }
  0x62   :  { %p3242_p12 = scmp.ne.s32.totalorder %s146_s30, %s3241_s7  ;;  %p3247_p0 = scmp.lt.s32.totalorder %s3241_s7, %s3241_s7 }
  0x64   :  { %p3248_p1 = por %p3247_p0, %p3246_p13 }
  0x66   :  { %p3249_p2 = pnand %p3248_p1, %p3242_p12 }
  0x68   :  { %3252 = shalt.err (!%p3249_p2)
}
  0x69   :  { %151 = dma.hbm_to_vmem [thread:$0]  %s3929_s15, 512, %s146_s30, [#allocation19], %s3286_s24, %s3286_s24, %s3287_s2  }
  0x6a   :  { %s3296_s25 = smov [#allocation21]  }
  0x6b   :  { %s159_s14 = sshll.u32 %s3296_s25, 4  ;;  %s160_s14 = int_to_ptr.vmem [resolvable:$true] %s159_s14 }
  0x6c   :  { %s3261_s3 = scalar_lea.vmem %s160_s14, 512  ;;  %p3266_p4 = scmp.lt.s32.totalorder %s160_s14, %s160_s14 }
  0x6d   :  { %p3262_p3 = scmp.ne.s32.totalorder %s160_s14, %s3261_s3  ;;  %p3267_p5 = scmp.lt.s32.totalorder %s3261_s3, %s3261_s3 }
  0x6f   :  { %p3268_p6 = por %p3267_p5, %p3266_p4 }
  0x71   :  { %p3269_p7 = pnand %p3268_p6, %p3262_p3 }
  0x73   :  { %3272 = shalt.err (!%p3269_p7)
}
  0x74   :  { %165 = dma.hbm_to_vmem [thread:$0]  %s3931_s17, 512, %s160_s14, [#allocation22], %s3286_s24, %s3286_s24, %s3287_s2  }
  0x75   :  { %3273 = dma.done.wait [#allocation8], 128  }
  0x76   :  { %3274 = vsyncadd [#allocation8], 4294967168 }
  0x77   :  { %3275 = dma.done.wait [#allocation10], 1024  }
  0x78   :  { %3276 = vsyncadd [#allocation10], 4294966272 }
  0x79   :  { %3277 = dma.done.wait [#allocation13], 1024  }
  0x7a   :  { %3278 = vsyncadd [#allocation13], 4294966272 }
  0x7b   :  { %3279 = dma.done.wait [#allocation16], 1024  }
  0x7c   :  { %3280 = vsyncadd [#allocation16], 4294966272 }
  0x7d   :  { %3281 = dma.done.wait [#allocation19], 1024  }
  0x7e   :  { %3282 = vsyncadd [#allocation19], 4294966272 }
  0x7f   :  { %3283 = dma.done.wait [#allocation22], 512  }
  0x80   :  { %3284 = vsyncadd [#allocation22], 4294966784  ;;  %v3297_v0 = vmov 0.0   ;;  %vm3298_vm0 = vmmov 0   ;;  %v204_v1 = vld [vmem:[#allocation9 + $0x18] sm:$0xff]  ;;  %v203_v2 = vld [vmem:[#allocation9 + $0x10] sm:$0xff] }
  0x81   :  { %2690 = vmatprep.subr.mxu0 %v3297_v0  ;;  %2701 = vmatprep.subr.mxu1 %v3297_v0  ;;  %v291_v3 = vld [vmem:[#allocation12 + $0x18] sm:$0xff]  ;;  %v290_v4 = vld [vmem:[#allocation12 + $0x10] sm:$0xff]  ;;  %v202_v5 = vld [vmem:[#allocation9 + $0x8] sm:$0xff]  ;;  %vm212_vm1 = vcmask 261120   ;;  %s3944_s24 = sld [smem:[#allocation33_spill]]  ;;  %vm286_vm2 = vcmask 785408  }
  0x82   :  { %2698 = vmatprep.mubr.msk.f32.mxu0 %vm3298_vm0, %v3297_v0  ;;  %2709 = vmatprep.mubr.msk.f32.mxu1 %vm3298_vm0, %v3297_v0  ;;  %v289_v6 = vld [vmem:[#allocation12 + $0x8] sm:$0xff]  ;;  %v201_v7 = vld [vmem:[#allocation9] sm:$0xff]  ;;  %v200_v9 = vld [vmem:[#allocation7] sm:$0xff]  ;;  %s3300_s29 = smov 96   ;;  %vm581_vm3 = vcmask 253952   ;;  %s3945_s23 = sld [smem:[#allocation30_spill]] }
  0x83   :  { %2691 = vmatpush3.msra.mxu0 %v204_v1  ;;  %2702 = vmatpush3.msra.mxu1 %v291_v3  ;;  %v288_v8 = vld [vmem:[#allocation12] sm:$0xff]  ;;  %v3475_v10 = vld [vmem:[#allocation11 + $0x18] sm:$0xff]  ;;  %v3479_v11 = vld [vmem:[#allocation11 + $0x10] sm:$0xff]  ;;  %vm2506_vm4 = vcmask 7168  }
  0x84   :  { %2692 = vmatprep.subr.mxu0 %v3297_v0  ;;  %2703 = vmatprep.subr.mxu1 %v3297_v0  ;;  %v3481_v12 = vld [vmem:[#allocation14 + $0x18] sm:$0xff]  ;;  %v3487_v13 = vld [vmem:[#allocation11 + $0x8] sm:$0xff]  ;;  %v3489_v14 = vld [vmem:[#allocation14 + $0x10] sm:$0xff] }
  0x85   :  { %2693 = vmatpush3.msra.mxu0 %v203_v2  ;;  %2704 = vmatpush3.msra.mxu1 %v290_v4  ;;  %v3495_v15 = vld [vmem:[#allocation11] sm:$0xff]  ;;  %v3499_v16 = vld [vmem:[#allocation14 + $0x8] sm:$0xff]  ;;  %v2535_v20 = vld [vmem:[%s3922_s8] ss:$0 sm:$0xff]  ;;  %s3299_s8 = smov 64  }
  0x86   :  { %2694 = vmatprep.subr.mxu0 %v3297_v0  ;;  %2705 = vmatprep.subr.mxu1 %v3297_v0  ;;  %v3506_v17 = vld [vmem:[#allocation14] sm:$0xff]  ;;  %v3546_v26 = vld [vmem:[%s3919_s5] sm:$0x1] }
  0x87   :  { %2695 = vmatpush3.msra.mxu0 %v202_v5  ;;  %2706 = vmatpush3.msra.mxu1 %v289_v6  ;;  %v2533_v18 = vld [vmem:[%s3944_s24] ss:$0 sm:$0xff] }
  0x88   :  { %2696 = vmatprep.subr.mxu0 %v3297_v0  ;;  %2707 = vmatprep.subr.mxu1 %v3297_v0  ;;  %v3552_v29 = vld [vmem:[%s3923_s9] sm:$0x1]  ;;  %s2045_s25 = scalar_lea.vmem [#allocation4], %s3945_s23  ;;  %s2047_s3 = scalar_lea.vmem [#allocation5], %s3945_s23 }
  0x89   :  { %2697 = vmatpush3.msra.mxu0 %v201_v7  ;;  %2708 = vmatpush3.msra.mxu1 %v288_v8 }
  0x8a   :  { %2699 = vmatmul.mubr.msk.f32.vlgmr.msra.gmra.mxu0 %vm212_vm1, %v200_v9  ;;  %2712 = vmatprep.subr.mxu0 %v3297_v0 }
  0x8b   :  { %2713 = vmatpush3.msra.mxu0 %v3475_v10  ;;  %2723 = vmatprep.subr.mxu1 %v3297_v0 }
  0x8c   :  { %2714 = vmatprep.subr.mxu0 %v3297_v0  ;;  %2710 = vmatmul.mubr.msk.f32.vlgmr.msra.gmra.mxu1 %vm212_vm1, %v200_v9 }
  0x8d   :  { %2715 = vmatpush3.msra.mxu0 %v3479_v11  ;;  %2724 = vmatpush3.msra.mxu1 %v3481_v12 }
  0x8e   :  { %2716 = vmatprep.subr.mxu0 %v3297_v0  ;;  %2725 = vmatprep.subr.mxu1 %v3297_v0 }
  0x8f   :  { %2717 = vmatpush3.msra.mxu0 %v3487_v13  ;;  %2726 = vmatpush3.msra.mxu1 %v3489_v14 }
  0x90   :  { %2718 = vmatprep.subr.mxu0 %v3297_v0  ;;  %2727 = vmatprep.subr.mxu1 %v3297_v0 }
  0x91   :  { %2719 = vmatpush3.msra.mxu0 %v3495_v15  ;;  %2720 = vmatprep.mubr.msk.f32.mxu0 %vm3298_vm0, %v3297_v0 }
  0x92   :  { %2728 = vmatpush3.msra.mxu1 %v3499_v16  ;;  %2721 = vmatmul.mubr.f32.vlgmr.msra.gmra.mxu0 %v3297_v0 }
  0x93   :  { %2729 = vmatprep.subr.mxu1 %v3297_v0  ;;  %2731 = vmatprep.mubr.msk.f32.mxu1 %vm3298_vm0, %v3297_v0 }
  0x94   :  { %2730 = vmatpush3.msra.mxu1 %v3506_v17  ;;  %2734 = vmatprep.subr.mxu0 %v3297_v0 }
  0x95   :  { %2732 = vmatmul.mubr.f32.vlgmr.msra.gmra.mxu1 %v3297_v0  ;;  %2735 = vmatpush3.msra.mxu0 %v3475_v10 }
  0x96   :  { %2736 = vmatprep.subr.mxu0 %v3297_v0  ;;  %2745 = vmatprep.subr.mxu1 %v3297_v0 }
  0x97   :  { %2737 = vmatpush3.msra.mxu0 %v3479_v11  ;;  %2746 = vmatpush3.msra.mxu1 %v3481_v12 }
  0x98   :  { %2738 = vmatprep.subr.mxu0 %v3297_v0  ;;  %2747 = vmatprep.subr.mxu1 %v3297_v0 }
  0x99   :  { %2739 = vmatpush3.msra.mxu0 %v3487_v13  ;;  %2742 = vmatprep.mubr.msk.f32.mxu0 %vm3298_vm0, %v3297_v0 }
  0x9a   :  { %2740 = vmatprep.subr.mxu0 %v3297_v0  ;;  %2748 = vmatpush3.msra.mxu1 %v3489_v14 }
  0x9b   :  { %2741 = vmatpush3.msra.mxu0 %v3495_v15  ;;  %2749 = vmatprep.subr.mxu1 %v3297_v0 }
  0x9c   :  { %2750 = vmatpush3.msra.mxu1 %v3499_v16  ;;  %2753 = vmatprep.mubr.msk.f32.mxu1 %vm3298_vm0, %v3297_v0 }
  0x9d   :  { %2751 = vmatprep.subr.mxu1 %v3297_v0  ;;  %2756 = vmatprep.subr.mxu0 %v3297_v0 }
  0x9e   :  { %2752 = vmatpush3.msra.mxu1 %v3506_v17 }
  0x9f   :  { %2767 = vmatprep.subr.mxu1 %v3297_v0 }
 0x14a   :  { %v282_v19 = vpop.f32.mrf.mxu0 }
 0x14b   :  { %v283_v21 = vadd.f32 %v2533_v18, %v282_v19 }
 0x14c   :  { %v2700_v22 = vpop.f32.mrf.mxu0  ;;  %v365_v23 = vpop.f32.mrf.mxu1 }
 0x14d   :  { %287 = vst.msk [vmem:[#allocation2] sm:$0xff] %vm286_vm2, %v283_v21  ;;  %v366_v24 = vadd.f32 %v2535_v20, %v365_v23 }
 0x14e   :  { %v2711_v25 = vpop.f32.mrf.mxu1 }
 0x14f   :  { %369 = vst.msk [vmem:[#allocation3] sm:$0xff] %vm286_vm2, %v366_v24 }
 0x152   :  { %v450_v27 = vpop.f32.mrf.mxu0 }
 0x153   :  { %v451_v28 = vadd.f32 %v450_v27, %v3546_v26 }
 0x154   :  { %v2722_v30 = vpop.f32.mrf.mxu0  ;;  %v380_v34 = vld [vmem:[#allocation2] sm:$0x1]  ;;  %v588_v19 = vld [vmem:[#allocation2 + $0x1] sm:$0x1] }
 0x155   :  { %v547_v31 = vpop.f32.mrf.mxu1  ;;  %462 = vrot.lane.b32.xlu0 %v451_v28, %s3299_s8  ;;  %v454_v35 = vadd.f32 %v451_v28, %v380_v34 }
 0x156   :  { %v548_v32 = vadd.f32 %v547_v31, %v3552_v29  ;;  %v480_v36 = vld [vmem:[#allocation3 + $0x7] sm:$0x1]  ;;  %v687_v21 = vld [vmem:[#allocation3 + $0x6] sm:$0x1] }
 0x157   :  { %v2733_v33 = vpop.f32.mrf.mxu1  ;;  %v2537_v37 = vmul.f32 -1.442695, %v454_v35 }
 0x158   :  { %v551_v38 = vadd.f32 %v548_v32, %v480_v36 }
 0x159   :  { %559 = vrot.lane.b32.xlu0 %v548_v32, %s3299_s8  ;;  %2963 = vpow2.f32 %v2537_v37 }
 0x15a   :  { %v2538_v39 = vmul.f32 -1.442695, %v551_v38 }
 0x15c   :  { %2965 = vpow2.f32 %v2538_v39 }
 0x166   :  { %v2964_v40 = vpop.eup %2963 }
 0x167   :  { %v458_v41 = vadd.f32 1.0, %v2964_v40 }
 0x169   :  { %v2966_v42 = vpop.eup %2965  ;;  %2967 = vrcp.f32 %v458_v41 }
 0x16a   :  { %v555_v43 = vadd.f32 1.0, %v2966_v42 }
 0x16c   :  { %2969 = vrcp.f32 %v555_v43 }
 0x176   :  { %v2968_v44 = vpop.eup %2967 }
 0x177   :  { %v472_v56 = vsub.f32 1.0, %v2968_v44  ;;  %v478_v58 = vmul.f32 0.0, %v2968_v44 }
 0x179   :  { %v2970_v47 = vpop.eup %2969 }
 0x17a   :  { %v569_v61 = vsub.f32 1.0, %v2970_v47  ;;  %v575_v63 = vmul.f32 0.0, %v2970_v47 }
 0x1c7   :  { %v463_v45 = vpop.permute.xlu0 %462 }
 0x1c8   :  { %v465_v46 = vmul.f32 %v2968_v44, %v463_v45 }
 0x1ca   :  { %467 = vrot.lane.b32.xlu1 %v465_v46, %s3299_s8 }
 0x1cb   :  { %v560_v48 = vpop.permute.xlu0 %559 }
 0x1cc   :  { %v562_v49 = vmul.f32 %v2970_v47, %v560_v48 }
 0x1ce   :  { %564 = vrot.lane.b32.xlu1 %v562_v49, %s3299_s8 }
 0x23c   :  { %v468_v50 = vpop.permute.xlu1 %467 }
 0x23d   :  { %v470_v51 = vadd.f32 %v468_v50, %v380_v34 }
 0x23f   :  { %2971 = vtanh.f32 %v470_v51 }
 0x240   :  { %v565_v52 = vpop.permute.xlu1 %564 }
 0x241   :  { %v567_v53 = vadd.f32 %v565_v52, %v480_v36 }
 0x243   :  { %2973 = vtanh.f32 %v567_v53 }
 0x24c   :  { %v2972_v54 = vpop.eup %2971 }
 0x24d   :  { %474 = vrot.lane.b32.xlu0 %v2972_v54, %s3300_s29 }
 0x250   :  { %v2974_v55 = vpop.eup %2973 }
 0x251   :  { %571 = vrot.lane.b32.xlu1 %v2974_v55, %s3300_s29 }
 0x2bf   :  { %v475_v57 = vpop.permute.xlu0 %474 }
 0x2c0   :  { %v477_v59 = vmul.f32 %v475_v57, %v472_v56 }
 0x2c2   :  { %v3561_v60 = vadd.f32 %v478_v58, %v477_v59 }
 0x2c3   :  { %v572_v62 = vpop.permute.xlu1 %571 }
 0x2c4   :  { %v574_v1 = vmul.f32 %v572_v62, %v569_v61  ;;  %578 = vrot.lane.b32.xlu0 %v3561_v60, %s3300_s29  ;;  %v796_v61 = vld [vmem:[#allocation2 + $0x2] sm:$0x1] }
 0x2c6   :  { %v3565_v2 = vadd.f32 %v575_v63, %v574_v1  ;;  %v895_v63 = vld [vmem:[#allocation3 + $0x5] sm:$0x1] }
 0x2c8   :  { %584 = vrot.lane.b32.xlu1 %v3565_v2, %s3300_s29 }
 0x336   :  { %v579_v3 = vpop.permute.xlu0 %578 }
 0x337   :  { %582 = vst.msk [vmem:[#allocation4] sm:$0x1] %vm581_vm3, %v579_v3  ;;  %2743 = vmatmul.mubr.msk.f32.vlgmr.msra.gmra.mxu0 %vm212_vm1, %v579_v3 }
 0x338   :  { %2757 = vmatpush3.msra.mxu0 %v3475_v10  ;;  %2764 = vmatprep.mubr.msk.f32.mxu0 %vm3298_vm0, %v3297_v0 }
 0x339   :  { %2758 = vmatprep.subr.mxu0 %v3297_v0 }
 0x33a   :  { %v585_v4 = vpop.permute.xlu1 %584  ;;  %2759 = vmatpush3.msra.mxu0 %v3479_v11 }
 0x33b   :  { %587 = vst.msk [vmem:[#allocation5 + $0x7] sm:$0x1] %vm581_vm3, %v585_v4  ;;  %2754 = vmatmul.mubr.msk.f32.vlgmr.msra.gmra.mxu1 %vm212_vm1, %v585_v4  ;;  %2760 = vmatprep.subr.mxu0 %v3297_v0 }
 0x33c   :  { %2761 = vmatpush3.msra.mxu0 %v3487_v13  ;;  %2768 = vmatpush3.msra.mxu1 %v3481_v12 }
 0x33d   :  { %2762 = vmatprep.subr.mxu0 %v3297_v0  ;;  %2769 = vmatprep.subr.mxu1 %v3297_v0 }
 0x33e   :  { %2763 = vmatpush3.msra.mxu0 %v3495_v15  ;;  %2770 = vmatpush3.msra.mxu1 %v3489_v14 }
 0x33f   :  { %2771 = vmatprep.subr.mxu1 %v3297_v0  ;;  %2775 = vmatprep.mubr.msk.f32.mxu1 %vm3298_vm0, %v3297_v0 }
 0x340   :  { %2772 = vmatpush3.msra.mxu1 %v3499_v16  ;;  %2778 = vmatprep.subr.mxu0 %v3297_v0 }
 0x341   :  { %2773 = vmatprep.subr.mxu1 %v3297_v0 }
 0x342   :  { %2774 = vmatpush3.msra.mxu1 %v3506_v17 }
 0x343   :  { %2789 = vmatprep.subr.mxu1 %v3297_v0 }
 0x3f7   :  { %v657_v5 = vpop.f32.mrf.mxu0 }
 0x3f8   :  { %v658_v6 = vadd.f32 %v657_v5, %v3546_v26 }
 0x3f9   :  { %v2744_v7 = vpop.f32.mrf.mxu0 }
 0x3fa   :  { %669 = vrot.lane.b32.xlu0 %v658_v6, %s3299_s8  ;;  %v661_v20 = vadd.f32 %v658_v6, %v588_v19 }
 0x3fb   :  { %v756_v8 = vpop.f32.mrf.mxu1 }
 0x3fc   :  { %v757_v9 = vadd.f32 %v756_v8, %v3552_v29  ;;  %v2540_v22 = vmul.f32 -1.442695, %v661_v20 }
 0x3fd   :  { %v2755_v18 = vpop.f32.mrf.mxu1 }
 0x3fe   :  { %768 = vrot.lane.b32.xlu1 %v757_v9, %s3299_s8  ;;  %v760_v23 = vadd.f32 %v757_v9, %v687_v21  ;;  %2975 = vpow2.f32 %v2540_v22 }
 0x400   :  { %v2542_v24 = vmul.f32 -1.442695, %v760_v23 }
 0x402   :  { %2977 = vpow2.f32 %v2542_v24 }
 0x40b   :  { %v2976_v25 = vpop.eup %2975 }
 0x40c   :  { %v665_v27 = vadd.f32 1.0, %v2976_v25 }
 0x40e   :  { %2979 = vrcp.f32 %v665_v27 }
 0x40f   :  { %v2978_v28 = vpop.eup %2977 }
 0x410   :  { %v764_v30 = vadd.f32 1.0, %v2978_v28 }
 0x412   :  { %2981 = vrcp.f32 %v764_v30 }
 0x41b   :  { %v2980_v31 = vpop.eup %2979 }
 0x41c   :  { %v679_v43 = vsub.f32 1.0, %v2980_v31  ;;  %v685_v45 = vmul.f32 %v2980_v31, %v3561_v60 }
 0x41f   :  { %v2982_v34 = vpop.eup %2981 }
 0x420   :  { %v778_v48 = vsub.f32 1.0, %v2982_v34  ;;  %v784_v50 = vmul.f32 %v2982_v34, %v3565_v2 }
 0x46c   :  { %v670_v32 = vpop.permute.xlu0 %669 }
 0x46d   :  { %v672_v33 = vmul.f32 %v2980_v31, %v670_v32 }
 0x46f   :  { %674 = vrot.lane.b32.xlu0 %v672_v33, %s3299_s8 }
 0x470   :  { %v769_v35 = vpop.permute.xlu1 %768 }
 0x471   :  { %v771_v36 = vmul.f32 %v2982_v34, %v769_v35 }
 0x473   :  { %773 = vrot.lane.b32.xlu1 %v771_v36, %s3299_s8 }
 0x4e1   :  { %v675_v37 = vpop.permute.xlu0 %674 }
 0x4e2   :  { %v677_v38 = vadd.f32 %v675_v37, %v588_v19 }
 0x4e4   :  { %2983 = vtanh.f32 %v677_v38 }
 0x4e5   :  { %v774_v39 = vpop.permute.xlu1 %773 }
 0x4e6   :  { %v776_v40 = vadd.f32 %v774_v39, %v687_v21 }
 0x4e8   :  { %2985 = vtanh.f32 %v776_v40 }
 0x4f1   :  { %v2984_v41 = vpop.eup %2983 }
 0x4f2   :  { %681 = vrot.lane.b32.xlu0 %v2984_v41, %s3300_s29 }
 0x4f5   :  { %v2986_v42 = vpop.eup %2985 }
 0x4f6   :  { %780 = vrot.lane.b32.xlu1 %v2986_v42, %s3300_s29 }
 0x564   :  { %v682_v44 = vpop.permute.xlu0 %681 }
 0x565   :  { %v684_v46 = vmul.f32 %v682_v44, %v679_v43 }
 0x567   :  { %v3602_v47 = vadd.f32 %v685_v45, %v684_v46 }
 0x568   :  { %v781_v49 = vpop.permute.xlu1 %780 }
 0x569   :  { %v783_v51 = vmul.f32 %v781_v49, %v778_v48  ;;  %787 = vrot.lane.b32.xlu0 %v3602_v47, %s3300_s29  ;;  %v1004_v48 = vld [vmem:[#allocation2 + $0x3] sm:$0x1] }
 0x56b   :  { %v3607_v52 = vadd.f32 %v784_v50, %v783_v51  ;;  %v1103_v50 = vld [vmem:[#allocation3 + $0x4] sm:$0x1] }
 0x56d   :  { %792 = vrot.lane.b32.xlu1 %v3607_v52, %s3300_s29 }
 0x5db   :  { %v788_v53 = vpop.permute.xlu0 %787 }
 0x5dc   :  { %790 = vst.msk [vmem:[#allocation4 + $0x1] sm:$0x1] %vm581_vm3, %v788_v53  ;;  %2765 = vmatmul.mubr.msk.f32.vlgmr.msra.gmra.mxu0 %vm212_vm1, %v788_v53 }
 0x5dd   :  { %2779 = vmatpush3.msra.mxu0 %v3475_v10  ;;  %2786 = vmatprep.mubr.msk.f32.mxu0 %vm3298_vm0, %v3297_v0 }
 0x5de   :  { %2780 = vmatprep.subr.mxu0 %v3297_v0 }
 0x5df   :  { %v793_v54 = vpop.permute.xlu1 %792  ;;  %2781 = vmatpush3.msra.mxu0 %v3479_v11 }
 0x5e0   :  { %795 = vst.msk [vmem:[#allocation5 + $0x6] sm:$0x1] %vm581_vm3, %v793_v54  ;;  %2776 = vmatmul.mubr.msk.f32.vlgmr.msra.gmra.mxu1 %vm212_vm1, %v793_v54  ;;  %2782 = vmatprep.subr.mxu0 %v3297_v0 }
 0x5e1   :  { %2783 = vmatpush3.msra.mxu0 %v3487_v13  ;;  %2790 = vmatpush3.msra.mxu1 %v3481_v12 }
 0x5e2   :  { %2784 = vmatprep.subr.mxu0 %v3297_v0  ;;  %2791 = vmatprep.subr.mxu1 %v3297_v0 }
 0x5e3   :  { %2785 = vmatpush3.msra.mxu0 %v3495_v15  ;;  %2792 = vmatpush3.msra.mxu1 %v3489_v14 }
 0x5e4   :  { %2793 = vmatprep.subr.mxu1 %v3297_v0  ;;  %2797 = vmatprep.mubr.msk.f32.mxu1 %vm3298_vm0, %v3297_v0 }
 0x5e5   :  { %2794 = vmatpush3.msra.mxu1 %v3499_v16  ;;  %2800 = vmatprep.subr.mxu0 %v3297_v0 }
 0x5e6   :  { %2795 = vmatprep.subr.mxu1 %v3297_v0 }
 0x5e7   :  { %2796 = vmatpush3.msra.mxu1 %v3506_v17 }
 0x5e8   :  { %2811 = vmatprep.subr.mxu1 %v3297_v0 }
 0x69c   :  { %v865_v55 = vpop.f32.mrf.mxu0 }
 0x69d   :  { %v866_v56 = vadd.f32 %v865_v55, %v3546_v26 }
 0x69e   :  { %v2766_v57 = vpop.f32.mrf.mxu0 }
 0x69f   :  { %877 = vrot.lane.b32.xlu0 %v866_v56, %s3299_s8  ;;  %v869_v62 = vadd.f32 %v866_v56, %v796_v61 }
 0x6a0   :  { %v964_v58 = vpop.f32.mrf.mxu1 }
 0x6a1   :  { %v965_v59 = vadd.f32 %v964_v58, %v3552_v29  ;;  %v2544_v1 = vmul.f32 -1.442695, %v869_v62 }
 0x6a2   :  { %v2777_v60 = vpop.f32.mrf.mxu1 }
 0x6a3   :  { %976 = vrot.lane.b32.xlu1 %v965_v59, %s3299_s8  ;;  %v968_v2 = vadd.f32 %v965_v59, %v895_v63  ;;  %2987 = vpow2.f32 %v2544_v1 }
 0x6a5   :  { %v2546_v3 = vmul.f32 -1.442695, %v968_v2 }
 0x6a7   :  { %2989 = vpow2.f32 %v2546_v3 }
 0x6b0   :  { %v2988_v4 = vpop.eup %2987 }
 0x6b1   :  { %v873_v5 = vadd.f32 1.0, %v2988_v4 }
 0x6b3   :  { %2991 = vrcp.f32 %v873_v5 }
 0x6b4   :  { %v2990_v6 = vpop.eup %2989 }
 0x6b5   :  { %v972_v7 = vadd.f32 1.0, %v2990_v6 }
 0x6b7   :  { %2993 = vrcp.f32 %v972_v7 }
 0x6c0   :  { %v2992_v8 = vpop.eup %2991 }
 0x6c1   :  { %v887_v30 = vsub.f32 1.0, %v2992_v8  ;;  %v893_v32 = vmul.f32 %v2992_v8, %v3602_v47 }
 0x6c4   :  { %v2994_v19 = vpop.eup %2993 }
 0x6c5   :  { %v986_v35 = vsub.f32 1.0, %v2994_v19  ;;  %v992_v37 = vmul.f32 %v2994_v19, %v3607_v52 }
 0x711   :  { %v878_v9 = vpop.permute.xlu0 %877 }
 0x712   :  { %v880_v18 = vmul.f32 %v2992_v8, %v878_v9 }
 0x714   :  { %882 = vrot.lane.b32.xlu0 %v880_v18, %s3299_s8 }
 0x715   :  { %v977_v20 = vpop.permute.xlu1 %976 }
 0x716   :  { %v979_v21 = vmul.f32 %v2994_v19, %v977_v20 }
 0x718   :  { %981 = vrot.lane.b32.xlu1 %v979_v21, %s3299_s8 }
 0x786   :  { %v883_v22 = vpop.permute.xlu0 %882 }
 0x787   :  { %v885_v23 = vadd.f32 %v883_v22, %v796_v61 }
 0x789   :  { %2995 = vtanh.f32 %v885_v23 }
 0x78a   :  { %v982_v24 = vpop.permute.xlu1 %981 }
 0x78b   :  { %v984_v25 = vadd.f32 %v982_v24, %v895_v63 }
 0x78d   :  { %2997 = vtanh.f32 %v984_v25 }
 0x796   :  { %v2996_v27 = vpop.eup %2995 }
 0x797   :  { %889 = vrot.lane.b32.xlu0 %v2996_v27, %s3300_s29 }
 0x79a   :  { %v2998_v28 = vpop.eup %2997 }
 0x79b   :  { %988 = vrot.lane.b32.xlu1 %v2998_v28, %s3300_s29 }
 0x809   :  { %v890_v31 = vpop.permute.xlu0 %889 }
 0x80a   :  { %v892_v33 = vmul.f32 %v890_v31, %v887_v30 }
 0x80c   :  { %v3644_v34 = vadd.f32 %v893_v32, %v892_v33 }
 0x80d   :  { %v989_v36 = vpop.permute.xlu1 %988 }
 0x80e   :  { %v991_v38 = vmul.f32 %v989_v36, %v986_v35  ;;  %995 = vrot.lane.b32.xlu0 %v3644_v34, %s3300_s29  ;;  %v1212_v35 = vld [vmem:[#allocation2 + $0x4] sm:$0x1] }
 0x810   :  { %v3649_v39 = vadd.f32 %v992_v37, %v991_v38  ;;  %v1311_v37 = vld [vmem:[#allocation3 + $0x3] sm:$0x1] }
 0x812   :  { %1000 = vrot.lane.b32.xlu1 %v3649_v39, %s3300_s29 }
 0x880   :  { %v996_v40 = vpop.permute.xlu0 %995 }
 0x881   :  { %998 = vst.msk [vmem:[#allocation4 + $0x2] sm:$0x1] %vm581_vm3, %v996_v40  ;;  %2787 = vmatmul.mubr.msk.f32.vlgmr.msra.gmra.mxu0 %vm212_vm1, %v996_v40 }
 0x882   :  { %2801 = vmatpush3.msra.mxu0 %v3475_v10  ;;  %2808 = vmatprep.mubr.msk.f32.mxu0 %vm3298_vm0, %v3297_v0 }
 0x883   :  { %2802 = vmatprep.subr.mxu0 %v3297_v0 }
 0x884   :  { %v1001_v41 = vpop.permute.xlu1 %1000  ;;  %2803 = vmatpush3.msra.mxu0 %v3479_v11 }
 0x885   :  { %1003 = vst.msk [vmem:[#allocation5 + $0x5] sm:$0x1] %vm581_vm3, %v1001_v41  ;;  %2798 = vmatmul.mubr.msk.f32.vlgmr.msra.gmra.mxu1 %vm212_vm1, %v1001_v41  ;;  %2804 = vmatprep.subr.mxu0 %v3297_v0 }
 0x886   :  { %2805 = vmatpush3.msra.mxu0 %v3487_v13  ;;  %2812 = vmatpush3.msra.mxu1 %v3481_v12 }
 0x887   :  { %2806 = vmatprep.subr.mxu0 %v3297_v0  ;;  %2813 = vmatprep.subr.mxu1 %v3297_v0 }
 0x888   :  { %2807 = vmatpush3.msra.mxu0 %v3495_v15  ;;  %2814 = vmatpush3.msra.mxu1 %v3489_v14 }
 0x889   :  { %2815 = vmatprep.subr.mxu1 %v3297_v0  ;;  %2819 = vmatprep.mubr.msk.f32.mxu1 %vm3298_vm0, %v3297_v0 }
 0x88a   :  { %2816 = vmatpush3.msra.mxu1 %v3499_v16  ;;  %2822 = vmatprep.subr.mxu0 %v3297_v0 }
 0x88b   :  { %2817 = vmatprep.subr.mxu1 %v3297_v0 }
 0x88c   :  { %2818 = vmatpush3.msra.mxu1 %v3506_v17 }
 0x88d   :  { %2833 = vmatprep.subr.mxu1 %v3297_v0 }
 0x941   :  { %v1073_v42 = vpop.f32.mrf.mxu0 }
 0x942   :  { %v1074_v43 = vadd.f32 %v1073_v42, %v3546_v26 }
 0x943   :  { %v2788_v44 = vpop.f32.mrf.mxu0 }
 0x944   :  { %1085 = vrot.lane.b32.xlu0 %v1074_v43, %s3299_s8  ;;  %v1077_v49 = vadd.f32 %v1074_v43, %v1004_v48 }
 0x945   :  { %v1172_v45 = vpop.f32.mrf.mxu1 }
 0x946   :  { %v1173_v46 = vadd.f32 %v1172_v45, %v3552_v29  ;;  %v2548_v51 = vmul.f32 -1.442695, %v1077_v49 }
 0x947   :  { %v2799_v47 = vpop.f32.mrf.mxu1 }
 0x948   :  { %1184 = vrot.lane.b32.xlu1 %v1173_v46, %s3299_s8  ;;  %v1176_v52 = vadd.f32 %v1173_v46, %v1103_v50  ;;  %2999 = vpow2.f32 %v2548_v51 }
 0x94a   :  { %v2550_v53 = vmul.f32 -1.442695, %v1176_v52 }
 0x94c   :  { %3001 = vpow2.f32 %v2550_v53 }
 0x955   :  { %v3000_v54 = vpop.eup %2999 }
 0x956   :  { %v1081_v55 = vadd.f32 1.0, %v3000_v54 }
 0x958   :  { %3003 = vrcp.f32 %v1081_v55 }
 0x959   :  { %v3002_v56 = vpop.eup %3001 }
 0x95a   :  { %v1180_v57 = vadd.f32 1.0, %v3002_v56 }
 0x95c   :  { %3005 = vrcp.f32 %v1180_v57 }
 0x965   :  { %v3004_v58 = vpop.eup %3003 }
 0x966   :  { %v1095_v7 = vsub.f32 1.0, %v3004_v58  ;;  %v1101_v9 = vmul.f32 %v3004_v58, %v3644_v34 }
 0x969   :  { %v3006_v61 = vpop.eup %3005 }
 0x96a   :  { %v1194_v20 = vsub.f32 1.0, %v3006_v61  ;;  %v1200_v22 = vmul.f32 %v3006_v61, %v3649_v39 }
 0x9b6   :  { %v1086_v59 = vpop.permute.xlu0 %1085 }
 0x9b7   :  { %v1088_v60 = vmul.f32 %v3004_v58, %v1086_v59 }
 0x9b9   :  { %1090 = vrot.lane.b32.xlu0 %v1088_v60, %s3299_s8 }
 0x9ba   :  { %v1185_v62 = vpop.permute.xlu1 %1184 }
 0x9bb   :  { %v1187_v63 = vmul.f32 %v3006_v61, %v1185_v62 }
 0x9bd   :  { %1189 = vrot.lane.b32.xlu1 %v1187_v63, %s3299_s8 }
 0xa2b   :  { %v1091_v1 = vpop.permute.xlu0 %1090 }
 0xa2c   :  { %v1093_v2 = vadd.f32 %v1091_v1, %v1004_v48 }
 0xa2e   :  { %3007 = vtanh.f32 %v1093_v2 }
 0xa2f   :  { %v1190_v3 = vpop.permute.xlu1 %1189 }
 0xa30   :  { %v1192_v4 = vadd.f32 %v1190_v3, %v1103_v50 }
 0xa32   :  { %3009 = vtanh.f32 %v1192_v4 }
 0xa3b   :  { %v3008_v5 = vpop.eup %3007 }
 0xa3c   :  { %1097 = vrot.lane.b32.xlu0 %v3008_v5, %s3300_s29 }
 0xa3f   :  { %v3010_v6 = vpop.eup %3009 }
 0xa40   :  { %1196 = vrot.lane.b32.xlu1 %v3010_v6, %s3300_s29 }
 0xaae   :  { %v1098_v8 = vpop.permute.xlu0 %1097 }
 0xaaf   :  { %v1100_v18 = vmul.f32 %v1098_v8, %v1095_v7 }
 0xab1   :  { %v3686_v19 = vadd.f32 %v1101_v9, %v1100_v18 }
 0xab2   :  { %v1197_v21 = vpop.permute.xlu1 %1196 }
 0xab3   :  { %v1199_v23 = vmul.f32 %v1197_v21, %v1194_v20  ;;  %1203 = vrot.lane.b32.xlu0 %v3686_v19, %s3300_s29  ;;  %v1420_v20 = vld [vmem:[#allocation2 + $0x5] sm:$0x1] }
 0xab5   :  { %v3691_v24 = vadd.f32 %v1200_v22, %v1199_v23  ;;  %v1519_v22 = vld [vmem:[#allocation3 + $0x2] sm:$0x1] }
 0xab7   :  { %1208 = vrot.lane.b32.xlu1 %v3691_v24, %s3300_s29 }
 0xb25   :  { %v1204_v25 = vpop.permute.xlu0 %1203 }
 0xb26   :  { %1206 = vst.msk [vmem:[#allocation4 + $0x3] sm:$0x1] %vm581_vm3, %v1204_v25  ;;  %2809 = vmatmul.mubr.msk.f32.vlgmr.msra.gmra.mxu0 %vm212_vm1, %v1204_v25 }
 0xb27   :  { %2823 = vmatpush3.msra.mxu0 %v3475_v10  ;;  %2830 = vmatprep.mubr.msk.f32.mxu0 %vm3298_vm0, %v3297_v0 }
 0xb28   :  { %2824 = vmatprep.subr.mxu0 %v3297_v0 }
 0xb29   :  { %v1209_v27 = vpop.permute.xlu1 %1208  ;;  %2825 = vmatpush3.msra.mxu0 %v3479_v11 }
 0xb2a   :  { %1211 = vst.msk [vmem:[#allocation5 + $0x4] sm:$0x1] %vm581_vm3, %v1209_v27  ;;  %2820 = vmatmul.mubr.msk.f32.vlgmr.msra.gmra.mxu1 %vm212_vm1, %v1209_v27  ;;  %2826 = vmatprep.subr.mxu0 %v3297_v0 }
 0xb2b   :  { %2827 = vmatpush3.msra.mxu0 %v3487_v13  ;;  %2834 = vmatpush3.msra.mxu1 %v3481_v12 }
 0xb2c   :  { %2828 = vmatprep.subr.mxu0 %v3297_v0  ;;  %2835 = vmatprep.subr.mxu1 %v3297_v0 }
 0xb2d   :  { %2829 = vmatpush3.msra.mxu0 %v3495_v15  ;;  %2836 = vmatpush3.msra.mxu1 %v3489_v14 }
 0xb2e   :  { %2837 = vmatprep.subr.mxu1 %v3297_v0  ;;  %2841 = vmatprep.mubr.msk.f32.mxu1 %vm3298_vm0, %v3297_v0 }
 0xb2f   :  { %2838 = vmatpush3.msra.mxu1 %v3499_v16  ;;  %2844 = vmatprep.subr.mxu0 %v3297_v0 }
 0xb30   :  { %2839 = vmatprep.subr.mxu1 %v3297_v0 }
 0xb31   :  { %2840 = vmatpush3.msra.mxu1 %v3506_v17 }
 0xb32   :  { %2855 = vmatprep.subr.mxu1 %v3297_v0 }
 0xbe6   :  { %v1281_v28 = vpop.f32.mrf.mxu0 }
 0xbe7   :  { %v1282_v30 = vadd.f32 %v1281_v28, %v3546_v26 }
 0xbe8   :  { %v2810_v31 = vpop.f32.mrf.mxu0 }
 0xbe9   :  { %1293 = vrot.lane.b32.xlu0 %v1282_v30, %s3299_s8  ;;  %v1285_v36 = vadd.f32 %v1282_v30, %v1212_v35 }
 0xbea   :  { %v1380_v32 = vpop.f32.mrf.mxu1 }
 0xbeb   :  { %v1381_v33 = vadd.f32 %v1380_v32, %v3552_v29  ;;  %v2552_v38 = vmul.f32 -1.442695, %v1285_v36 }
 0xbec   :  { %v2821_v34 = vpop.f32.mrf.mxu1 }
 0xbed   :  { %1392 = vrot.lane.b32.xlu1 %v1381_v33, %s3299_s8  ;;  %v1384_v39 = vadd.f32 %v1381_v33, %v1311_v37  ;;  %3011 = vpow2.f32 %v2552_v38 }
 0xbef   :  { %v2554_v40 = vmul.f32 -1.442695, %v1384_v39 }
 0xbf1   :  { %3013 = vpow2.f32 %v2554_v40 }
 0xbfa   :  { %v3012_v41 = vpop.eup %3011 }
 0xbfb   :  { %v1289_v42 = vadd.f32 1.0, %v3012_v41 }
 0xbfd   :  { %3015 = vrcp.f32 %v1289_v42 }
 0xbfe   :  { %v3014_v43 = vpop.eup %3013 }
 0xbff   :  { %v1388_v44 = vadd.f32 1.0, %v3014_v43 }
 0xc01   :  { %3017 = vrcp.f32 %v1388_v44 }
 0xc0a   :  { %v3016_v45 = vpop.eup %3015 }
 0xc0b   :  { %v1303_v57 = vsub.f32 1.0, %v3016_v45  ;;  %v1309_v59 = vmul.f32 %v3016_v45, %v3686_v19 }
 0xc0e   :  { %v3018_v48 = vpop.eup %3017 }
 0xc0f   :  { %v1402_v62 = vsub.f32 1.0, %v3018_v48  ;;  %v1408_v1 = vmul.f32 %v3018_v48, %v3691_v24 }
 0xc5b   :  { %v1294_v46 = vpop.permute.xlu0 %1293 }
 0xc5c   :  { %v1296_v47 = vmul.f32 %v3016_v45, %v1294_v46 }
 0xc5e   :  { %1298 = vrot.lane.b32.xlu0 %v1296_v47, %s3299_s8 }
 0xc5f   :  { %v1393_v49 = vpop.permute.xlu1 %1392 }
 0xc60   :  { %v1395_v50 = vmul.f32 %v3018_v48, %v1393_v49 }
 0xc62   :  { %1397 = vrot.lane.b32.xlu1 %v1395_v50, %s3299_s8 }
 0xcd0   :  { %v1299_v51 = vpop.permute.xlu0 %1298 }
 0xcd1   :  { %v1301_v52 = vadd.f32 %v1299_v51, %v1212_v35 }
 0xcd3   :  { %3019 = vtanh.f32 %v1301_v52 }
 0xcd4   :  { %v1398_v53 = vpop.permute.xlu1 %1397 }
 0xcd5   :  { %v1400_v54 = vadd.f32 %v1398_v53, %v1311_v37 }
 0xcd7   :  { %3021 = vtanh.f32 %v1400_v54 }
 0xce0   :  { %v3020_v55 = vpop.eup %3019 }
 0xce1   :  { %1305 = vrot.lane.b32.xlu0 %v3020_v55, %s3300_s29 }
 0xce4   :  { %v3022_v56 = vpop.eup %3021 }
 0xce5   :  { %1404 = vrot.lane.b32.xlu1 %v3022_v56, %s3300_s29 }
 0xd53   :  { %v1306_v58 = vpop.permute.xlu0 %1305 }
 0xd54   :  { %v1308_v60 = vmul.f32 %v1306_v58, %v1303_v57  ;;  %v1727_v57 = vld [vmem:[#allocation3 + $0x1] sm:$0x1] }
 0xd56   :  { %v3728_v61 = vadd.f32 %v1309_v59, %v1308_v60 }
 0xd57   :  { %v1405_v63 = vpop.permute.xlu1 %1404 }
 0xd58   :  { %v1407_v2 = vmul.f32 %v1405_v63, %v1402_v62  ;;  %1411 = vrot.lane.b32.xlu0 %v3728_v61, %s3300_s29 }
 0xd5a   :  { %v3733_v3 = vadd.f32 %v1408_v1, %v1407_v2 }
 0xd5c   :  { %1416 = vrot.lane.b32.xlu1 %v3733_v3, %s3300_s29 }
 0xdca   :  { %v1412_v4 = vpop.permute.xlu0 %1411 }
 0xdcb   :  { %1414 = vst.msk [vmem:[#allocation4 + $0x4] sm:$0x1] %vm581_vm3, %v1412_v4  ;;  %2831 = vmatmul.mubr.msk.f32.vlgmr.msra.gmra.mxu0 %vm212_vm1, %v1412_v4 }
 0xdcc   :  { %2845 = vmatpush3.msra.mxu0 %v3475_v10  ;;  %2852 = vmatprep.mubr.msk.f32.mxu0 %vm3298_vm0, %v3297_v0 }
 0xdcd   :  { %2846 = vmatprep.subr.mxu0 %v3297_v0 }
 0xdce   :  { %v1417_v5 = vpop.permute.xlu1 %1416  ;;  %2847 = vmatpush3.msra.mxu0 %v3479_v11 }
 0xdcf   :  { %1419 = vst.msk [vmem:[#allocation5 + $0x3] sm:$0x1] %vm581_vm3, %v1417_v5  ;;  %2842 = vmatmul.mubr.msk.f32.vlgmr.msra.gmra.mxu1 %vm212_vm1, %v1417_v5  ;;  %2848 = vmatprep.subr.mxu0 %v3297_v0 }
 0xdd0   :  { %2849 = vmatpush3.msra.mxu0 %v3487_v13  ;;  %2856 = vmatpush3.msra.mxu1 %v3481_v12 }
 0xdd1   :  { %2850 = vmatprep.subr.mxu0 %v3297_v0  ;;  %2857 = vmatprep.subr.mxu1 %v3297_v0 }
 0xdd2   :  { %2851 = vmatpush3.msra.mxu0 %v3495_v15  ;;  %2858 = vmatpush3.msra.mxu1 %v3489_v14 }
 0xdd3   :  { %2859 = vmatprep.subr.mxu1 %v3297_v0  ;;  %2863 = vmatprep.mubr.msk.f32.mxu1 %vm3298_vm0, %v3297_v0 }
 0xdd4   :  { %2860 = vmatpush3.msra.mxu1 %v3499_v16  ;;  %2866 = vmatprep.subr.mxu0 %v3297_v0 }
 0xdd5   :  { %2861 = vmatprep.subr.mxu1 %v3297_v0 }
 0xdd6   :  { %2862 = vmatpush3.msra.mxu1 %v3506_v17 }
 0xdd7   :  { %2877 = vmatprep.subr.mxu1 %v3297_v0 }
 0xe8b   :  { %v1489_v6 = vpop.f32.mrf.mxu0 }
 0xe8c   :  { %v1490_v7 = vadd.f32 %v1489_v6, %v3546_v26 }
 0xe8d   :  { %v2832_v8 = vpop.f32.mrf.mxu0 }
 0xe8e   :  { %1501 = vrot.lane.b32.xlu0 %v1490_v7, %s3299_s8  ;;  %v1493_v21 = vadd.f32 %v1490_v7, %v1420_v20 }
 0xe8f   :  { %v1588_v9 = vpop.f32.mrf.mxu1 }
 0xe90   :  { %v1589_v18 = vadd.f32 %v1588_v9, %v3552_v29  ;;  %v2556_v23 = vmul.f32 -1.442695, %v1493_v21 }
 0xe91   :  { %v2843_v19 = vpop.f32.mrf.mxu1 }
 0xe92   :  { %1600 = vrot.lane.b32.xlu1 %v1589_v18, %s3299_s8  ;;  %v1592_v24 = vadd.f32 %v1589_v18, %v1519_v22  ;;  %3023 = vpow2.f32 %v2556_v23 }
 0xe94   :  { %v2558_v25 = vmul.f32 -1.442695, %v1592_v24 }
 0xe96   :  { %3025 = vpow2.f32 %v2558_v25 }
 0xe9f   :  { %v3024_v27 = vpop.eup %3023 }
 0xea0   :  { %v1497_v28 = vadd.f32 1.0, %v3024_v27 }
 0xea2   :  { %3027 = vrcp.f32 %v1497_v28 }
 0xea3   :  { %v3026_v30 = vpop.eup %3025 }
 0xea4   :  { %v1596_v31 = vadd.f32 1.0, %v3026_v30 }
 0xea6   :  { %3029 = vrcp.f32 %v1596_v31 }
 0xeaf   :  { %v3028_v32 = vpop.eup %3027 }
 0xeb0   :  { %v1511_v44 = vsub.f32 1.0, %v3028_v32  ;;  %v1517_v46 = vmul.f32 %v3028_v32, %v3728_v61 }
 0xeb3   :  { %v3030_v35 = vpop.eup %3029 }
 0xeb4   :  { %v1610_v49 = vsub.f32 1.0, %v3030_v35  ;;  %v1616_v51 = vmul.f32 %v3030_v35, %v3733_v3 }
 0xf00   :  { %v1502_v33 = vpop.permute.xlu0 %1501 }
 0xf01   :  { %v1504_v34 = vmul.f32 %v3028_v32, %v1502_v33 }
 0xf03   :  { %1506 = vrot.lane.b32.xlu0 %v1504_v34, %s3299_s8  ;;  %v3071_v34 = vld [vmem:[%s3919_s5] sm:$0x1] }
 0xf04   :  { %v1601_v36 = vpop.permute.xlu1 %1600 }
 0xf05   :  { %v1603_v37 = vmul.f32 %v3030_v35, %v1601_v36 }
 0xf07   :  { %1605 = vrot.lane.b32.xlu1 %v1603_v37, %s3299_s8 }
 0xf75   :  { %v1507_v38 = vpop.permute.xlu0 %1506 }
 0xf76   :  { %v1509_v39 = vadd.f32 %v1507_v38, %v1420_v20  ;;  %v3072_v38 = vld [vmem:[%s3923_s9] sm:$0x1] }
 0xf78   :  { %3031 = vtanh.f32 %v1509_v39 }
 0xf79   :  { %v1606_v40 = vpop.permute.xlu1 %1605 }
 0xf7a   :  { %v1608_v41 = vadd.f32 %v1606_v40, %v1519_v22 }
 0xf7c   :  { %3033 = vtanh.f32 %v1608_v41  ;;  %v1836_v41 = vld [vmem:[#allocation2 + $0x7] sm:$0x1] }
 0xf85   :  { %v3032_v42 = vpop.eup %3031 }
 0xf86   :  { %1513 = vrot.lane.b32.xlu0 %v3032_v42, %s3300_s29 }
 0xf89   :  { %v3034_v43 = vpop.eup %3033 }
 0xf8a   :  { %1612 = vrot.lane.b32.xlu1 %v3034_v43, %s3300_s29  ;;  %v1935_v43 = vld [vmem:[#allocation3] sm:$0x1] }
 0xff8   :  { %v1514_v45 = vpop.permute.xlu0 %1513 }
 0xff9   :  { %v1516_v47 = vmul.f32 %v1514_v45, %v1511_v44 }
 0xffb   :  { %v3770_v48 = vadd.f32 %v1517_v46, %v1516_v47 }
 0xffc   :  { %v1613_v50 = vpop.permute.xlu1 %1612 }
 0xffd   :  { %v1615_v52 = vmul.f32 %v1613_v50, %v1610_v49  ;;  %1619 = vrot.lane.b32.xlu0 %v3770_v48, %s3300_s29 }
 0xfff   :  { %v3775_v53 = vadd.f32 %v1616_v51, %v1615_v52 }
0x1001   :  { %1624 = vrot.lane.b32.xlu1 %v3775_v53, %s3300_s29 }
0x106f   :  { %v1620_v54 = vpop.permute.xlu0 %1619 }
0x1070   :  { %1622 = vst.msk [vmem:[#allocation4 + $0x5] sm:$0x1] %vm581_vm3, %v1620_v54  ;;  %2853 = vmatmul.mubr.msk.f32.vlgmr.msra.gmra.mxu0 %vm212_vm1, %v1620_v54 }
0x1071   :  { %2867 = vmatpush3.msra.mxu0 %v3475_v10  ;;  %2874 = vmatprep.mubr.msk.f32.mxu0 %vm3298_vm0, %v3297_v0 }
0x1072   :  { %2868 = vmatprep.subr.mxu0 %v3297_v0 }
0x1073   :  { %v1625_v55 = vpop.permute.xlu1 %1624  ;;  %2869 = vmatpush3.msra.mxu0 %v3479_v11 }
0x1074   :  { %1627 = vst.msk [vmem:[#allocation5 + $0x2] sm:$0x1] %vm581_vm3, %v1625_v55  ;;  %2864 = vmatmul.mubr.msk.f32.vlgmr.msra.gmra.mxu1 %vm212_vm1, %v1625_v55  ;;  %2870 = vmatprep.subr.mxu0 %v3297_v0 }
0x1075   :  { %2871 = vmatpush3.msra.mxu0 %v3487_v13  ;;  %2878 = vmatpush3.msra.mxu1 %v3481_v12 }
0x1076   :  { %2872 = vmatprep.subr.mxu0 %v3297_v0  ;;  %2879 = vmatprep.subr.mxu1 %v3297_v0 }
0x1077   :  { %2873 = vmatpush3.msra.mxu0 %v3495_v15  ;;  %2880 = vmatpush3.msra.mxu1 %v3489_v14 }
0x1078   :  { %2881 = vmatprep.subr.mxu1 %v3297_v0  ;;  %2885 = vmatprep.mubr.msk.f32.mxu1 %vm3298_vm0, %v3297_v0 }
0x1079   :  { %2882 = vmatpush3.msra.mxu1 %v3499_v16  ;;  %2888 = vmatprep.subr.mxu0 %v3297_v0  ;;  %v1628_v16 = vld [vmem:[#allocation2 + $0x6] sm:$0x1] }
0x107a   :  { %2883 = vmatprep.subr.mxu1 %v3297_v0 }
0x107b   :  { %2884 = vmatpush3.msra.mxu1 %v3506_v17 }
0x107c   :  { %2899 = vmatprep.subr.mxu1 %v3297_v0 }
0x1130   :  { %v1697_v10 = vpop.f32.mrf.mxu0 }
0x1131   :  { %v1698_v11 = vadd.f32 %v1697_v10, %v3546_v26 }
0x1132   :  { %v2854_v12 = vpop.f32.mrf.mxu0 }
0x1133   :  { %1709 = vrot.lane.b32.xlu0 %v1698_v11, %s3299_s8  ;;  %v1701_v56 = vadd.f32 %v1698_v11, %v1628_v16 }
0x1134   :  { %v1796_v13 = vpop.f32.mrf.mxu1 }
0x1135   :  { %v1797_v14 = vadd.f32 %v1796_v13, %v3552_v29  ;;  %v2560_v58 = vmul.f32 -1.442695, %v1701_v56  ;;  %v2052_v56 = vld [vmem:[#allocation15 + $0x18] sm:$0xff] }
0x1136   :  { %v2865_v15 = vpop.f32.mrf.mxu1 }
0x1137   :  { %1808 = vrot.lane.b32.xlu1 %v1797_v14, %s3299_s8  ;;  %v1800_v59 = vadd.f32 %v1797_v14, %v1727_v57  ;;  %3035 = vpow2.f32 %v2560_v58  ;;  %v2056_v58 = vld [vmem:[#allocation17 + $0x18] sm:$0xff] }
0x1139   :  { %v2562_v17 = vmul.f32 -1.442695, %v1800_v59  ;;  %v2050_v59 = vld [vmem:[#allocation15 + $0x8] sm:$0xff] }
0x113b   :  { %3037 = vpow2.f32 %v2562_v17  ;;  %v2055_v17 = vld [vmem:[#allocation17 + $0x10] sm:$0xff] }
0x1144   :  { %v3036_v60 = vpop.eup %3035 }
0x1145   :  { %v1705_v61 = vadd.f32 1.0, %v3036_v60  ;;  %v2049_v60 = vld [vmem:[#allocation15] sm:$0xff] }
0x1147   :  { %3039 = vrcp.f32 %v1705_v61  ;;  %v2054_v61 = vld [vmem:[#allocation17 + $0x8] sm:$0xff] }
0x1148   :  { %v3038_v26 = vpop.eup %3037 }
0x1149   :  { %v1804_v62 = vadd.f32 1.0, %v3038_v26 }
0x114b   :  { %3041 = vrcp.f32 %v1804_v62 }
0x1154   :  { %v3040_v63 = vpop.eup %3039 }
0x1155   :  { %v1719_v19 = vsub.f32 1.0, %v3040_v63  ;;  %v1725_v21 = vmul.f32 %v3040_v63, %v3770_v48 }
0x1158   :  { %v3042_v2 = vpop.eup %3041 }
0x1159   :  { %v1818_v24 = vsub.f32 1.0, %v3042_v2  ;;  %v1824_v27 = vmul.f32 %v3042_v2, %v3775_v53 }
0x11a5   :  { %v1710_v1 = vpop.permute.xlu0 %1709 }
0x11a6   :  { %v1712_v29 = vmul.f32 %v3040_v63, %v1710_v1 }
0x11a8   :  { %1714 = vrot.lane.b32.xlu0 %v1712_v29, %s3299_s8  ;;  %v2053_v29 = vld [vmem:[#allocation17] sm:$0xff] }
0x11a9   :  { %v1809_v3 = vpop.permute.xlu1 %1808 }
0x11aa   :  { %v1811_v4 = vmul.f32 %v3042_v2, %v1809_v3 }
0x11ac   :  { %1813 = vrot.lane.b32.xlu1 %v1811_v4, %s3299_s8 }
0x121a   :  { %v1715_v5 = vpop.permute.xlu0 %1714 }
0x121b   :  { %v1717_v6 = vadd.f32 %v1715_v5, %v1628_v16 }
0x121d   :  { %3043 = vtanh.f32 %v1717_v6 }
0x121e   :  { %v1814_v7 = vpop.permute.xlu1 %1813 }
0x121f   :  { %v1816_v8 = vadd.f32 %v1814_v7, %v1727_v57  ;;  %v2051_v57 = vld [vmem:[#allocation15 + $0x10] sm:$0xff] }
0x1221   :  { %3045 = vtanh.f32 %v1816_v8  ;;  %v2214_v8 = vlaneseq }
0x122a   :  { %v3044_v9 = vpop.eup %3043 }
0x122b   :  { %1721 = vrot.lane.b32.xlu0 %v3044_v9, %s3300_s29  ;;  %v3853_v9 = vshrl.u32 %v2214_v8, 7 }
0x122e   :  { %v3046_v18 = vpop.eup %3045 }
0x122f   :  { %1820 = vrot.lane.b32.xlu1 %v3046_v18, %s3300_s29  ;;  %v2205_v18 = vld [vmem:[%s3927_s13] sm:$0x1] }
0x129d   :  { %v1722_v20 = vpop.permute.xlu0 %1721 }
0x129e   :  { %v1724_v22 = vmul.f32 %v1722_v20, %v1719_v19  ;;  %v2216_v19 = vsub.s32 0, %v3853_v9 }
0x12a0   :  { %v3812_v23 = vadd.f32 %v1725_v21, %v1724_v22  ;;  %v2217_v20 = vrot.slane %v2205_v18, %v2216_v19 }
0x12a1   :  { %v1821_v25 = vpop.permute.xlu1 %1820 }
0x12a2   :  { %v1823_v28 = vmul.f32 %v1821_v25, %v1818_v24  ;;  %1827 = vrot.lane.b32.xlu0 %v3812_v23, %s3300_s29  ;;  %v2237_v25 = vld [vmem:[#allocation18 + $0x10] sm:$0xff] }
0x12a4   :  { %v3817_v30 = vadd.f32 %v1824_v27, %v1823_v28  ;;  %v2243_v27 = vld [vmem:[#allocation20 + $0x18] sm:$0xff]  ;;  %v2236_v28 = vld [vmem:[#allocation18 + $0x8] sm:$0xff] }
0x12a6   :  { %1832 = vrot.lane.b32.xlu1 %v3817_v30, %s3300_s29 }
0x1314   :  { %v1828_v31 = vpop.permute.xlu0 %1827 }
0x1315   :  { %1830 = vst.msk [vmem:[#allocation4 + $0x6] sm:$0x1] %vm581_vm3, %v1828_v31  ;;  %2875 = vmatmul.mubr.msk.f32.vlgmr.msra.gmra.mxu0 %vm212_vm1, %v1828_v31  ;;  %v2242_v31 = vld [vmem:[#allocation20 + $0x10] sm:$0xff] }
0x1316   :  { %2896 = vmatprep.mubr.msk.f32.mxu0 %vm3298_vm0, %v3297_v0  ;;  %2889 = vmatpush3.msra.mxu0 %v2056_v58 }
0x1317   :  { %2890 = vmatprep.subr.mxu0 %v3297_v0 }
0x1318   :  { %v1833_v32 = vpop.permute.xlu1 %1832  ;;  %2891 = vmatpush3.msra.mxu0 %v2055_v17  ;;  %v2402_v17 = vld [vmem:[%s3932_s18] sm:$0x1] }
0x1319   :  { %1835 = vst.msk [vmem:[#allocation5 + $0x1] sm:$0x1] %vm581_vm3, %v1833_v32  ;;  %2886 = vmatmul.mubr.msk.f32.vlgmr.msra.gmra.mxu1 %vm212_vm1, %v1833_v32  ;;  %2892 = vmatprep.subr.mxu0 %v3297_v0  ;;  %v2235_v32 = vld [vmem:[#allocation18] sm:$0xff] }
0x131a   :  { %2907 = vmatprep.mubr.msk.f32.mxu1 %vm3298_vm0, %v3297_v0  ;;  %2900 = vmatpush3.msra.mxu1 %v2052_v56 }
0x131b   :  { %2901 = vmatprep.subr.mxu1 %v3297_v0  ;;  %2893 = vmatpush3.msra.mxu0 %v2054_v61 }
0x131c   :  { %2902 = vmatpush3.msra.mxu1 %v2051_v57  ;;  %2894 = vmatprep.subr.mxu0 %v3297_v0 }
0x131d   :  { %2903 = vmatprep.subr.mxu1 %v3297_v0  ;;  %2895 = vmatpush3.msra.mxu0 %v2053_v29  ;;  %v2574_v29 = vld [vmem:[%s3933_s19] ss:$0 sm:$0xff] }
0x131e   :  { %2904 = vmatpush3.msra.mxu1 %v2050_v59  ;;  %2910 = vmatprep.subr.mxu0 %v3297_v0 }
0x131f   :  { %2905 = vmatprep.subr.mxu1 %v3297_v0 }
0x1320   :  { %2906 = vmatpush3.msra.mxu1 %v2049_v60 }
0x1321   :  { %2921 = vmatprep.subr.mxu1 %v3297_v0 }
0x13d5   :  { %v1905_v33 = vpop.f32.mrf.mxu0 }
0x13d6   :  { %v1906_v35 = vadd.f32 %v3071_v34, %v1905_v33  ;;  %v2241_v33 = vld [vmem:[#allocation20 + $0x8] sm:$0xff] }
0x13d7   :  { %v2876_v36 = vpop.f32.mrf.mxu0 }
0x13d8   :  { %1917 = vrot.lane.b32.xlu0 %v1906_v35, %s3299_s8  ;;  %v1909_v42 = vadd.f32 %v1906_v35, %v1836_v41  ;;  %v2240_v35 = vld [vmem:[#allocation20] sm:$0xff] }
0x13d9   :  { %v2004_v37 = vpop.f32.mrf.mxu1 }
0x13da   :  { %v2005_v39 = vadd.f32 %v3072_v38, %v2004_v37  ;;  %v2564_v44 = vmul.f32 -1.442695, %v1909_v42 }
0x13db   :  { %v2887_v40 = vpop.f32.mrf.mxu1 }
0x13dc   :  { %2016 = vrot.lane.b32.xlu1 %v2005_v39, %s3299_s8  ;;  %v2008_v45 = vadd.f32 %v2005_v39, %v1935_v43  ;;  %3047 = vpow2.f32 %v2564_v44  ;;  %v2203_v40 = vld [vmem:[%s3926_s12] sm:$0x1] }
0x13de   :  { %v2566_v46 = vmul.f32 -1.442695, %v2008_v45 }
0x13e0   :  { %3049 = vpow2.f32 %v2566_v46 }
0x13e9   :  { %v3048_v47 = vpop.eup %3047 }
0x13ea   :  { %v1913_v48 = vadd.f32 1.0, %v3048_v47 }
0x13ec   :  { %3051 = vrcp.f32 %v1913_v48 }
0x13ed   :  { %v3050_v49 = vpop.eup %3049 }
0x13ee   :  { %v2012_v50 = vadd.f32 1.0, %v3050_v49 }
0x13f0   :  { %3053 = vrcp.f32 %v2012_v50 }
0x13f9   :  { %v3052_v51 = vpop.eup %3051 }
0x13fa   :  { %v1927_v26 = vsub.f32 1.0, %v3052_v51  ;;  %v1933_v63 = vmul.f32 %v3052_v51, %v3812_v23  ;;  %v2238_v23 = vld [vmem:[#allocation18 + $0x18] sm:$0xff] }
0x13fd   :  { %v3054_v54 = vpop.eup %3053 }
0x13fe   :  { %v2026_v3 = vsub.f32 1.0, %v3054_v54  ;;  %v2032_v5 = vmul.f32 %v3054_v54, %v3817_v30 }
0x144a   :  { %v1918_v52 = vpop.permute.xlu0 %1917 }
0x144b   :  { %v1920_v53 = vmul.f32 %v3052_v51, %v1918_v52 }
0x144d   :  { %1922 = vrot.lane.b32.xlu0 %v1920_v53, %s3299_s8 }
0x144e   :  { %v2017_v55 = vpop.permute.xlu1 %2016 }
0x144f   :  { %v2019_v10 = vmul.f32 %v3054_v54, %v2017_v55 }
0x1451   :  { %2021 = vrot.lane.b32.xlu1 %v2019_v10, %s3299_s8 }
0x14bf   :  { %v1923_v11 = vpop.permute.xlu0 %1922 }
0x14c0   :  { %v1925_v12 = vadd.f32 %v1923_v11, %v1836_v41 }
0x14c2   :  { %3055 = vtanh.f32 %v1925_v12  ;;  %v2401_v12 = vld [vmem:[#allocation21 + $0x18] sm:$0xff] }
0x14c3   :  { %v2022_v13 = vpop.permute.xlu1 %2021 }
0x14c4   :  { %v2024_v14 = vadd.f32 %v2022_v13, %v1935_v43  ;;  %v2400_v13 = vld [vmem:[#allocation21 + $0x10] sm:$0xff] }
0x14c6   :  { %3057 = vtanh.f32 %v2024_v14  ;;  %v2399_v14 = vld [vmem:[#allocation21 + $0x8] sm:$0xff] }
0x14cf   :  { %v3056_v15 = vpop.eup %3055 }
0x14d0   :  { %1929 = vrot.lane.b32.xlu0 %v3056_v15, %s3300_s29  ;;  %v2398_v15 = vld [vmem:[#allocation21] sm:$0xff] }
0x14d3   :  { %v3058_v16 = vpop.eup %3057 }
0x14d4   :  { %2028 = vrot.lane.b32.xlu1 %v3058_v16, %s3300_s29 }
0x1542   :  { %v1930_v62 = vpop.permute.xlu0 %1929 }
0x1543   :  { %v1932_v1 = vmul.f32 %v1930_v62, %v1927_v26 }
0x1545   :  { %v1934_v2 = vadd.f32 %v1933_v63, %v1932_v1 }
0x1546   :  { %v2029_v4 = vpop.permute.xlu1 %2028 }
0x1547   :  { %v2031_v6 = vmul.f32 %v2029_v4, %v2026_v3  ;;  %2035 = vrot.lane.b32.xlu0 %v1934_v2, %s3300_s29 }
0x1549   :  { %v2033_v7 = vadd.f32 %v2032_v5, %v2031_v6 }
0x154b   :  { %2040 = vrot.lane.b32.xlu1 %v2033_v7, %s3300_s29  ;;  %2218 = vrot.lane.b32.xlu0 %v2217_v20, %s3299_s8 }
0x15b9   :  { %v2036_v21 = vpop.permute.xlu0 %2035 }
0x15ba   :  { %2038 = vst.msk [vmem:[#allocation4 + $0x7] sm:$0x1] %vm581_vm3, %v2036_v21 }
0x15bd   :  { %v2041_v22 = vpop.permute.xlu1 %2040  ;;  %v2219_v53 = vpop.permute.xlu0 %2218 }
0x15be   :  { %2043 = vst.msk [vmem:[#allocation5] sm:$0x1] %vm581_vm3, %v2041_v22 }
0x15c1   :  { %v2046_v24 = vld [vmem:[%s2045_s25] sm:$0x1]  ;;  %v2234_v34 = vld [vmem:[#allocation4] sm:$0xff] }
0x15c2   :  { %2908 = vmatmul.mubr.msk.f32.vlgmr.msra.gmra.mxu1 %vm212_vm1, %v2046_v24 }
0x15c3   :  { %2922 = vmatpush3.msra.mxu1 %v2238_v23  ;;  %2929 = vmatprep.mubr.msk.f32.mxu1 %vm3298_vm0, %v3297_v0 }
0x15c4   :  { %2923 = vmatprep.subr.mxu1 %v3297_v0 }
0x15c5   :  { %2924 = vmatpush3.msra.mxu1 %v2237_v25  ;;  %v2048_v30 = vld [vmem:[%s2047_s3] sm:$0x1]  ;;  %v2239_v36 = vld [vmem:[#allocation5] sm:$0xff] }
0x15c6   :  { %2925 = vmatprep.subr.mxu1 %v3297_v0  ;;  %2897 = vmatmul.mubr.msk.f32.vlgmr.msra.gmra.mxu0 %vm212_vm1, %v2048_v30 }
0x15c7   :  { %2911 = vmatpush3.msra.mxu0 %v2243_v27  ;;  %2926 = vmatpush3.msra.mxu1 %v2236_v28 }
0x15c8   :  { %2912 = vmatprep.subr.mxu0 %v3297_v0  ;;  %2927 = vmatprep.subr.mxu1 %v3297_v0 }
0x15c9   :  { %2913 = vmatpush3.msra.mxu0 %v2242_v31  ;;  %2928 = vmatpush3.msra.mxu1 %v2235_v32 }
0x15ca   :  { %2914 = vmatprep.subr.mxu0 %v3297_v0  ;;  %2930 = vmatmul.mubr.msk.f32.vlgmr.msra.gmra.mxu1 %vm212_vm1, %v2234_v34 }
0x15cb   :  { %2915 = vmatpush3.msra.mxu0 %v2241_v33  ;;  %2918 = vmatprep.mubr.msk.f32.mxu0 %vm3298_vm0, %v3297_v0 }
0x15cc   :  { %2916 = vmatprep.subr.mxu0 %v3297_v0 }
0x15cd   :  { %2917 = vmatpush3.msra.mxu0 %v2240_v35 }
0x15ce   :  { %2919 = vmatmul.mubr.msk.f32.vlgmr.msra.gmra.mxu0 %vm212_vm1, %v2239_v36  ;;  %2932 = vmatprep.subr.mxu0 %v3297_v0 }
0x15cf   :  { %2940 = vmatprep.mubr.msk.f32.mxu0 %vm3298_vm0, %v3297_v0  ;;  %2933 = vmatpush3.msra.mxu0 %v2401_v12 }
0x15d0   :  { %2934 = vmatprep.subr.mxu0 %v3297_v0 }
0x15d1   :  { %2935 = vmatpush3.msra.mxu0 %v2400_v13 }
0x15d2   :  { %2936 = vmatprep.subr.mxu0 %v3297_v0 }
0x15d3   :  { %2937 = vmatpush3.msra.mxu0 %v2399_v14 }
0x15d4   :  { %2938 = vmatprep.subr.mxu0 %v3297_v0  ;;  %v2572_v0 = vld [vmem:[%s3930_s16] ss:$0 sm:$0xff] }
0x15d5   :  { %2939 = vmatpush3.msra.mxu0 %v2398_v15 }
0x1682   :  { %v2199_v37 = vpop.f32.mrf.mxu1 }
0x1684   :  { %v2909_v38 = vpop.f32.mrf.mxu1 }
0x1686   :  { %v2126_v39 = vpop.f32.mrf.mxu0 }
0x1687   :  { %v2200_v41 = vadd.f32 %v2199_v37, %v2126_v39 }
0x1688   :  { %v2898_v42 = vpop.f32.mrf.mxu0 }
0x1689   :  { %v2204_v43 = vadd.f32 %v2203_v40, %v2200_v41 }
0x168a   :  { %v2386_v44 = vpop.f32.mrf.mxu1 }
0x168b   :  { %v2206_v45 = vadd.f32 %v2205_v18, %v2204_v43 }
0x168c   :  { %v2931_v46 = vpop.f32.mrf.mxu1 }
0x168d   :  { %v2569_v47 = vmul.f32 -1.442695, %v2206_v45 }
0x168e   :  { %v2313_v48 = vpop.f32.mrf.mxu0 }
0x168f   :  { %3059 = vpow2.f32 %v2569_v47  ;;  %v2387_v49 = vadd.f32 %v2386_v44, %v2313_v48 }
0x1690   :  { %v2920_v50 = vpop.f32.mrf.mxu0 }
0x1691   :  { %v2397_v62 = vadd.f32 %v2572_v0, %v2387_v49 }
0x169c   :  { %v3060_v51 = vpop.eup %3059 }
0x169d   :  { %v2210_v52 = vadd.f32 1.0, %v3060_v51 }
0x169f   :  { %3061 = vrcp.f32 %v2210_v52 }
0x16ac   :  { %v3062_v54 = vpop.eup %3061 }
0x16ad   :  { %v2221_v55 = vmul.f32 %v3062_v54, %v2219_v53  ;;  %v2228_v56 = vsub.f32 1.0, %v3062_v54 }
0x16af   :  { %2223 = vrot.lane.b32.xlu1 %v2221_v55, %s3299_s8 }
0x1721   :  { %v2224_v10 = vpop.permute.xlu1 %2223 }
0x1722   :  { %v2226_v11 = vadd.f32 %v2224_v10, %v2204_v43 }
0x1724   :  { %3063 = vtanh.f32 %v2226_v11 }
0x1731   :  { %v3064_v16 = vpop.eup %3063 }
0x1732   :  { %2230 = vrot.lane.b32.xlu0 %v3064_v16, %s3300_s29 }
0x17a4   :  { %v2231_v57 = vpop.permute.xlu0 %2230 }
0x17a5   :  { %v2233_v58 = vmul.f32 %v2231_v57, %v2228_v56 }
0x17a7   :  { %2404 = vrot.lane.b32.xlu1 %v2233_v58, %s3300_s29 }
0x1819   :  { %v2405_v59 = vpop.permute.xlu1 %2404 }
0x181a   :  { %2941 = vmatmul.mubr.msk.f32.vlgmr.msra.gmra.mxu0 %vm212_vm1, %v2405_v59 }
0x18da   :  { %v2474_v60 = vpop.f32.mrf.mxu0 }
0x18db   :  { %v2475_v61 = vadd.f32 %v2474_v60, %v2402_v17 }
0x18dc   :  { %v2942_v26 = vpop.f32.mrf.mxu0 }
0x18dd   :  { %v2481_v63 = vrot.slane %v2475_v61, %v2216_v19 }
0x18df   :  { %v2482_v1 = vadd.f32 %v2481_v63, %v2397_v62 }
0x18e1   :  { %3065 = vtanh.f32 %v2482_v1 }
0x18ee   :  { %v3066_v2 = vpop.eup %3065 }
0x18ef   :  { %v2491_v3 = vmul.f32 %v3066_v2, %v2574_v29 }
0x18f1   :  { %v2492_v4 = vsel %vm212_vm1, %v2491_v3, 0.0 }
0x18f2   :  { %2493 = vadd.xlane.f32.xlu0 %v2492_v4 }
0x197b   :  { %v2494_v5 = vpop.xlane.xlu0 %2493 }
0x197c   :  { %v2495_v6 = vrot.slane %v2494_v5, 4 }
0x197e   :  { %v2496_v7 = vmax.f32 %v2494_v5, %v2495_v6 }
0x1980   :  { %v2497_v8 = vrot.slane %v2496_v7, 2 }
0x1982   :  { %v2498_v18 = vmax.f32 %v2496_v7, %v2497_v8 }
0x1984   :  { %v2499_v20 = vrot.slane %v2498_v18, 1 }
0x1986   :  { %v2500_v21 = vmax.f32 %v2498_v18, %v2499_v20 }
0x1988   :  { %2943 = vpush %v2500_v21 }
0x19b9   :  { %s2944_s16 = spop %2943 }
0x19ba   :  { %v2502_v9 = vstv %s2944_s16 }
0x19bb   :  { %v2503_v19 = vsub.f32 %v2494_v5, %v2502_v9 }
0x19bd   :  { %v2504_v22 = vmul.f32 1.442695, %v2503_v19 }
0x19bf   :  { %3067 = vpow2.f32 %v2504_v22 }
0x19cc   :  { %v3068_v23 = vpop.eup %3067 }
0x19cd   :  { %v2507_v24 = vsel %vm2506_vm4, %v3068_v23, 0.0 }
0x19ce   :  { %2508 = vadd.xlane.f32.xlu1 %v2507_v24 }
0x1a57   :  { %v2509_v25 = vpop.xlane.xlu1 %2508 }
0x1a58   :  { %v2510_v27 = vrot.slane %v2509_v25, 4 }
0x1a5a   :  { %v2511_v28 = vadd.f32 %v2510_v27, %v2509_v25 }
0x1a5c   :  { %v2512_v30 = vrot.slane %v2511_v28, 2 }
0x1a5e   :  { %v2513_v31 = vadd.f32 %v2512_v30, %v2511_v28 }
0x1a60   :  { %v2514_v32 = vrot.slane %v2513_v31, 1 }
0x1a62   :  { %v2515_v33 = vadd.f32 %v2514_v32, %v2513_v31 }
0x1a64   :  { %2945 = vpush %v2515_v33 }
0x1a95   :  { %s2946_s18 = spop %2945 }
0x1a96   :  { %v2517_v34 = vstv %s2946_s18 }
0x1a97   :  { %3069 = vrcp.f32 %v2517_v34 }
0x1aa4   :  { %v3070_v35 = vpop.eup %3069 }
0x1aa5   :  { %v2519_v36 = vmul.f32 %v3070_v35, %v3068_v23 }
0x1aa7   :  { %2520 = vst.msk [vmem:[%s3934_s20] sm:$0xff] %vm2506_vm4, %v2519_v36 }
0x1aa8   :  { %2525 = vsyncpa [#allocation8], 1 }
0x1aa9   :  { %2526 = vsyncpa [#allocation10], 1 }
0x1aaa   :  { %2527 = vsyncpa [#allocation13], 1 }
0x1aab   :  { %2528 = vsyncpa [#allocation16], 1 }
0x1aac   :  { %2529 = vsyncpa [#allocation19], 1 }
0x1aad   :  { %2530 = vsyncpa [#allocation22], 1 }

</bundles_post_ra>
